<compile_context>
chip_gen: v6e
topology: v6e:2x2x1
jax: 0.10.0
libtpu: 0.0.40
codegen_flags: <defaults>
</compile_context>

<pallas_src>
import functools

import jax
import jax.numpy as jnp
from jax.experimental import pallas as pl
from jax.experimental.pallas import tpu as pltpu


# --------------------------------------------------------------------------- #
# Fused decoder-layer kernel: a single grid step covers the whole batch.
# --------------------------------------------------------------------------- #
def _decoder_layer_kernel(
    tgt_ref,      # (B, Lq, D)
    mem_ref,      # (B, Lk, D)
    pos_ref,      # (B, Lk, D)
    qpos_ref,     # (B, Lq, D)
    qsine_ref,    # (B, Lq, D)
    wd_ref,       # (D, 13*D + F)   all input-dim-D weights, packed on columns
    w2_ref,       # (F, D)          linear2
    vec_ref,      # (16, VMAX)      biases + LayerNorm params, one padded row each
    out_ref,      # (B, Lq, D)
    *, nhead, is_first, eps, approx_recip):
    B, Lq, D = tgt_ref.shape
    Lk = mem_ref.shape[1]
    F = w2_ref.shape[0]
    H = nhead
    hd = D // H

    wd = wd_ref[...]
    vec = vec_ref[...]

    # Collapse batch into rows for all non-attention math (2x sublane occupancy).
    tgt2d = tgt_ref[...].reshape(B * Lq, D)
    mem2d = mem_ref[...].reshape(B * Lk, D)
    pos2d = pos_ref[...].reshape(B * Lk, D)
    qpos2d = qpos_ref[...].reshape(B * Lq, D)
    qsine2d = qsine_ref[...].reshape(B * Lq, D)

    def mm(x, w):
        return jnp.dot(x, w, preferred_element_type=jnp.float32)

    def vrow(i, width):
        return vec[i:i + 1, 0:width]              # (1, width), broadcasts on add

    def layer_norm(x, g_row, b_row):
        # single-pass stats: the two reductions are independent (no mu -> var chain)
        mu = jnp.mean(x, axis=-1, keepdims=True)
        ex2 = jnp.mean(x * x, axis=-1, keepdims=True)
        var = ex2 - mu * mu
        return (x - mu) * jax.lax.rsqrt(var + eps) * vrow(g_row, D) + vrow(b_row, D)

    def softmax_rows(s):
        s = s - jnp.max(s, axis=-1, keepdims=True)
        p = jnp.exp(s)
        denom = jnp.sum(p, axis=-1, keepdims=True)
        if approx_recip:
            return p * pl.reciprocal(denom, approx=True)   # EUP slot, off crit path
        return p / denom

    def mha(q_parts, k_parts, v, w_out, b_out):
        # torch per-head feature = cat(part_head_slices, dim=3).  Never materialized:
        #   cat(a,b).cat(c,d)^T == a.c^T + b.d^T   (split along the contraction axis)
        # Head merge before out_proj uses the same identity on the out-proj weight rows.
        head_dim = len(q_parts) * hd
        scale = float(head_dim) ** -0.5
        Lq_ = q_parts[0].shape[1]
        acc = None
        for h in range(H):            # static; TODO(synk): fori_loop at production sizes
            lo, hi = h * hd, (h + 1) * hd
            s = None
            for qp, kp in zip(q_parts, k_parts):
                part = jnp.einsum('bqd,bkd->bqk', qp[:, :, lo:hi] * scale,
                                  kp[:, :, lo:hi],
                                  preferred_element_type=jnp.float32)
                s = part if s is None else s + part
            p = softmax_rows(s)
            ah = jnp.einsum('bqk,bkd->bqd', p, v[:, :, lo:hi],
                            preferred_element_type=jnp.float32)        # (B, Lq_, hd)
            contrib = mm(ah.reshape(B * Lq_, hd), w_out[lo:hi, :])     # (B*Lq_, D)
            acc = contrib if acc is None else acc + contrib
        return acc + b_out                                             # (B*Lq_, D)

    # ------------------------------ self-attention -------------------------- #
    t_proj = mm(tgt2d, wd[:, 0:3 * D]) + vrow(0, 3 * D)        # [q_c | k_c | v]
    p_proj = mm(qpos2d, wd[:, 3 * D:5 * D]) + vrow(1, 2 * D)   # [q_p | k_p]
    q_sa = (t_proj[:, 0:D] + p_proj[:, 0:D]).reshape(B, Lq, D)
    k_sa = (t_proj[:, D:2 * D] + p_proj[:, D:2 * D]).reshape(B, Lq, D)
    v_sa = t_proj[:, 2 * D:3 * D].reshape(B, Lq, D)
    sa = mha([q_sa], [k_sa], v_sa, wd[:, 5 * D:6 * D], vrow(2, D))
    tgt1 = layer_norm(tgt2d + sa, 10, 11)                      # dropout1 = identity

    # ------------------------------ cross-attention -------------------------- #
    q_ca2d = mm(tgt1, wd[:, 6 * D:7 * D])
    if is_first:                                   # cat([tgt1, qpos], 1) @ Wq ==
        q_ca2d = q_ca2d + mm(qpos2d, wd[:, 7 * D:8 * D])       # sum of partial dots
    q_ca2d = q_ca2d + vrow(3, D)                               # merged bias
    m_proj = mm(mem2d, wd[:, 8 * D:10 * D]) + vrow(4, 2 * D)   # [k_c | v]
    kpos2d = mm(pos2d, wd[:, 10 * D:11 * D]) + vrow(5, D)
    if is_first:
        k_ca2d = m_proj[:, 0:D] + kpos2d
    else:
        k_ca2d = m_proj[:, 0:D]
    qse2d = mm(qsine2d, wd[:, 11 * D:12 * D]) + vrow(6, D)

    ca = mha([q_ca2d.reshape(B, Lq, D), qse2d.reshape(B, Lq, D)],
             [k_ca2d.reshape(B, Lk, D), kpos2d.reshape(B, Lk, D)],
             m_proj[:, D:2 * D].reshape(B, Lk, D),
             wd[:, 12 * D:13 * D], vrow(7, D))
    tgt2 = layer_norm(tgt1 + ca, 12, 13)                       # dropout2 = identity

    # ----------------------------------- FFN --------------------------------- #
    h1 = jnp.maximum(mm(tgt2, wd[:, 13 * D:13 * D + F]) + vrow(8, F), 0.0)
    ffn = mm(h1, w2_ref[...]) + vrow(9, D)
    out_ref[...] = layer_norm(tgt2 + ffn, 14, 15).reshape(B, Lq, D)  # dropout3 = identity


# --------------------------------------------------------------------------- #
# Host-side parameter packing: call ONCE, outside jit, and cache the result.
# --------------------------------------------------------------------------- #
def pack_decoder_layer_params(params, *, is_first):
    D = params['sa_qcontent'][0].shape[0]
    F = params['linear1'][0].shape[1]

    def w(n): return params[n][0]
    def b(n): return params[n][1]

    # TODO(synk): cast wd / w2 to bf16 at production sizes (keep f32 accumulate).
    wd = jnp.concatenate([
        w('sa_qcontent'), w('sa_kcontent'), w('sa_v'),   # [0, 3D)     <- tgt
        w('sa_qpos'), w('sa_kpos'),                      # [3D, 5D)    <- query_pos
        w('sa_out'),                                     # [5D, 6D)
        w('ca_qcontent'),                                # [6D, 7D)    <- tgt1
        w('ca_qpos'),                                    # [7D, 8D)    <- query_pos (is_first)
        w('ca_kcontent'), w('ca_v'),                     # [8D, 10D)   <- memory
        w('ca_kpos'),                                    # [10D, 11D)  <- pos
        w('ca_qpos_sine'),                               # [11D, 12D)  <- query_sine_embed
        w('ca_out'),                                     # [12D, 13D)
        w('linear1'),                                    # [13D, 13D+F)
    ], axis=1)
    w2 = w('linear2')                                    # (F, D)

    vmax = max(3 * D, F)

    def row(*vs):
        v = jnp.concatenate(vs) if len(vs) > 1 else vs[0]
        return jnp.pad(v, (0, vmax - v.shape[0]))

    b_ca_q = b('ca_qcontent') + b('ca_qpos') if is_first else b('ca_qcontent')
    vec = jnp.stack([
        row(b('sa_qcontent'), b('sa_kcontent'), b('sa_v')),   # 0
        row(b('sa_qpos'), b('sa_kpos')),                      # 1
        row(b('sa_out')),                                     # 2
        row(b_ca_q),                                          # 3
        row(b('ca_kcontent'), b('ca_v')),                     # 4
        row(b('ca_kpos')),                                    # 5
        row(b('ca_qpos_sine')),                               # 6
        row(b('ca_out')),                                     # 7
        row(b('linear1')),                                    # 8
        row(b('linear2')),                                    # 9
        row(params['norm1'][0]), row(params['norm1'][1]),     # 10, 11
        row(params['norm2'][0]), row(params['norm2'][1]),     # 12, 13
        row(params['norm3'][0]), row(params['norm3'][1]),     # 14, 15
    ])
    return {'wd': wd, 'w2': w2, 'vec': vec}


# --------------------------------------------------------------------------- #
# Wrapper: launches the single fused pallas_call.
# --------------------------------------------------------------------------- #
def decoder_layer_forward_pallas(packed, tgt, memory, pos, query_pos, query_sine_embed,
                                 *, nhead, is_first, approx_recip=False):
    Lq, B, D = tgt.shape
    Lk = memory.shape[0]
    wd, w2, vec = packed['wd'], packed['w2'], packed['vec']

    # (L, B, D) -> (B, L, D) once around the fused call.
    # TODO(synk): keep activations batch-major upstream to drop these HBM transposes.
    tgt_b = tgt.transpose(1, 0, 2)
    mem_b = memory.transpose(1, 0, 2)
    pos_b = pos.transpose(1, 0, 2)
    qpos_b = query_pos.transpose(1, 0, 2)
    qsine_b = query_sine_embed.transpose(1, 0, 2)

    spec3 = lambda s: pl.BlockSpec(s, lambda i: (0, 0, 0))
    spec2 = lambda s: pl.BlockSpec(s, lambda i: (0, 0))

    out = pl.pallas_call(
        functools.partial(_decoder_layer_kernel, nhead=nhead, is_first=is_first,
                          eps=1e-5, approx_recip=approx_recip),
        grid=(1,),   # whole batch folded into one step (no serial grid overhead)
        in_specs=[spec3(tgt_b.shape), spec3(mem_b.shape), spec3(pos_b.shape),
                  spec3(qpos_b.shape), spec3(qsine_b.shape),
                  spec2(wd.shape), spec2(w2.shape), spec2(vec.shape)],
        out_specs=pl.BlockSpec((B, Lq, D), lambda i: (0, 0, 0)),
        out_shape=jax.ShapeDtypeStruct((B, Lq, D), jnp.float32),
        compiler_params=pltpu.CompilerParams(dimension_semantics=("arbitrary",)),
    )(tgt_b, mem_b, pos_b, qpos_b, qsine_b, wd, w2, vec)
    return out.transpose(1, 0, 2)                              # back to (Lq, B, D)


# --------------------------------------------------------------------------- #
# Pure-JAX reference (mirrors torch forward_post with unmerged weights)
# --------------------------------------------------------------------------- #
def decoder_layer_forward_ref(params, tgt, memory, pos, query_pos, query_sine_embed,
                              nhead, is_first):
    Lq, B, D = tgt.shape
    Lk = memory.shape[0]
    H = nhead
    hd = D // H

    def lin(name, x):
        w, b = params[name]
        return x @ w + b

    def ln(name, x, eps=1e-5):
        g, b = params[name]
        mu = x.mean(-1, keepdims=True)
        var = ((x - mu) ** 2).mean(-1, keepdims=True)
        return (x - mu) / jnp.sqrt(var + eps) * g + b

    def split_heads(x, head):
        L_, B_, E = x.shape
        nH = E // head
        return x.reshape(L_, B_, nH, head).transpose(1, 2, 0, 3).reshape(B_ * nH, L_, head)

    def merge_heads(x, L_, B_, vdim):
        return x.transpose(1, 0, 2).reshape(L_, B_, vdim)

    def attn(q, k, v, scale):
        s = jnp.einsum('bld,bmd->blm', q * scale, k)
        p = jax.nn.softmax(s, axis=-1)
        return jnp.einsum('blm,bmd->bld', p, v)

    # self-attention
    q = lin('sa_qcontent', tgt) + lin('sa_qpos', query_pos)
    k = lin('sa_kcontent', tgt) + lin('sa_kpos', query_pos)
    v = lin('sa_v', tgt)
    a = attn(split_heads(q, hd), split_heads(k, hd), split_heads(v, hd), float(hd) ** -0.5)
    tgt = ln('norm1', tgt + lin('sa_out', merge_heads(a, Lq, B, D)))
    # cross-attention
    q_content = lin('ca_qcontent', tgt)
    k_content = lin('ca_kcontent', memory)
    v = lin('ca_v', memory)
    k_pos = lin('ca_kpos', pos)
    if is_first:
        q = q_content + lin('ca_qpos', query_pos)
        k = k_content + k_pos
    else:
        q, k = q_content, k_content
    qse = lin('ca_qpos_sine', query_sine_embed)
    q = jnp.concatenate([q.reshape(Lq, B, H, hd), qse.reshape(Lq, B, H, hd)], 3).reshape(Lq, B, 2 * D)
    k = jnp.concatenate([k.reshape(Lk, B, H, hd), k_pos.reshape(Lk, B, H, hd)], 3).reshape(Lk, B, 2 * D)
    a = attn(split_heads(q, 2 * hd), split_heads(k, 2 * hd), split_heads(v, hd),
             float(2 * hd) ** -0.5)
    tgt = ln('norm2', tgt + lin('ca_out', merge_heads(a, Lq, B, D)))
    # FFN
    w1, b1 = params['linear1']
    w2, b2 = params['linear2']
    tgt = ln('norm3', tgt + (jnp.maximum(tgt @ w1 + b1, 0.0) @ w2 + b2))
    return tgt


# --------------------------------------------------------------------------- #
# Deterministic parameter construction (shapes from ConditionalDecoderLayer.__init__)
# --------------------------------------------------------------------------- #
def init_params(key, D, F):
    lin_names = ['sa_qcontent', 'sa_qpos', 'sa_kcontent', 'sa_kpos', 'sa_v', 'sa_out',
                 'ca_qcontent', 'ca_qpos', 'ca_kcontent', 'ca_kpos', 'ca_v',
                 'ca_qpos_sine', 'ca_out']
    keys = jax.random.split(key, len(lin_names) + 5)
    params = {}
    for n, k in zip(lin_names, keys[:len(lin_names)]):
        kw, kb = jax.random.split(k)
        params[n] = (0.05 * jax.random.normal(kw, (D, D), jnp.float32),
                     0.05 * jax.random.normal(kb, (D,), jnp.float32))
    k1, k2, k3, k4, k5 = keys[len(lin_names):]
    params['linear1'] = (0.05 * jax.random.normal(k1, (D, F), jnp.float32),
                         0.05 * jax.random.normal(jax.random.fold_in(k1, 1), (F,), jnp.float32))
    params['linear2'] = (0.05 * jax.random.normal(k2, (F, D), jnp.float32),
                         0.05 * jax.random.normal(jax.random.fold_in(k2, 1), (D,), jnp.float32))
    for n, kk in zip(['norm1', 'norm2', 'norm3'], [k3, k4, k5]):
        params[n] = (1.0 + 0.1 * jax.random.normal(kk, (D,), jnp.float32),
                     0.05 * jax.random.normal(jax.random.fold_in(kk, 1), (D,), jnp.float32))
    return params


# --------------------------------------------------------------------------- #
if __name__ == "__main__":
    hidden_dim, nhead, dim_feedforward = 32, 4, 64
    num_queries, hw, bs = 8, 16, 2

    key = jax.random.PRNGKey(0)
    kp, k1, k2, k3, k4, k5 = jax.random.split(key, 6)
    params = init_params(kp, hidden_dim, dim_feedforward)

    tgt = jax.random.normal(k1, (num_queries, bs, hidden_dim), jnp.float32)
    memory = jax.random.normal(k2, (hw, bs, hidden_dim), jnp.float32)
    pos = jax.random.normal(k3, (hw, bs, hidden_dim), jnp.float32)
    query_pos = jax.random.normal(k4, (num_queries, bs, hidden_dim), jnp.float32)
    query_sine_embed = jax.random.normal(k5, (num_queries, bs, hidden_dim), jnp.float32)

    # Slabs built once, outside jit (cached across forwards).
    packed = pack_decoder_layer_params(params, is_first=True)

    fwd = jax.jit(functools.partial(decoder_layer_forward_pallas,
                                    nhead=nhead, is_first=True, approx_recip=False))
    out = fwd(packed, tgt, memory, pos, query_pos, query_sine_embed)
    out = jax.block_until_ready(out)

    ref = decoder_layer_forward_ref(params, tgt, memory, pos, query_pos, query_sine_embed,
                                    nhead, is_first=True)
    ref = jax.block_until_ready(ref)

    assert out.shape == (num_queries, bs, hidden_dim)
    assert jnp.allclose(out, ref, atol=5e-4, rtol=5e-4), \
        f"max abs diff {float(jnp.max(jnp.abs(out - ref)))}"
    print("KERNEL_OK")
</pallas_src>

<mosaic_0001>
module attributes {stable_mosaic.version = 11 : i64} {
  func.func @_decoder_layer_kernel(%arg0: i32, %arg1: memref<2x8x32xf32, #tpu.memory_space<vmem>>, %arg2: memref<2x16x32xf32, #tpu.memory_space<vmem>>, %arg3: memref<2x16x32xf32, #tpu.memory_space<vmem>>, %arg4: memref<2x8x32xf32, #tpu.memory_space<vmem>>, %arg5: memref<2x8x32xf32, #tpu.memory_space<vmem>>, %arg6: memref<32x480xf32, #tpu.memory_space<vmem>>, %arg7: memref<64x32xf32, #tpu.memory_space<vmem>>, %arg8: memref<16x96xf32, #tpu.memory_space<vmem>>, %arg9: memref<2x8x32xf32, #tpu.memory_space<vmem>>) attributes {dimension_semantics = [#tpu.dimension_semantics<arbitrary>], iteration_bounds = array<i64: 1>, scalar_prefetch = 0 : i64, scratch_operands = 0 : i64, tpu.core_type = #tpu.core_type<tc>, window_params = [{pipeline_mode = #tpu.pipeline_mode<synchronous>, transform_indices = @transform_0, window_bounds = array<i64: 2, 8, 32>}, {pipeline_mode = #tpu.pipeline_mode<synchronous>, transform_indices = @transform_1, window_bounds = array<i64: 2, 16, 32>}, {pipeline_mode = #tpu.pipeline_mode<synchronous>, transform_indices = @transform_2, window_bounds = array<i64: 2, 16, 32>}, {pipeline_mode = #tpu.pipeline_mode<synchronous>, transform_indices = @transform_3, window_bounds = array<i64: 2, 8, 32>}, {pipeline_mode = #tpu.pipeline_mode<synchronous>, transform_indices = @transform_4, window_bounds = array<i64: 2, 8, 32>}, {pipeline_mode = #tpu.pipeline_mode<synchronous>, transform_indices = @transform_5, window_bounds = array<i64: 32, 480>}, {pipeline_mode = #tpu.pipeline_mode<synchronous>, transform_indices = @transform_6, window_bounds = array<i64: 64, 32>}, {pipeline_mode = #tpu.pipeline_mode<synchronous>, transform_indices = @transform_7, window_bounds = array<i64: 16, 96>}, {pipeline_mode = #tpu.pipeline_mode<synchronous>, transform_indices = @transform_8, window_bounds = array<i64: 2, 8, 32>}]} {
    %c0 = arith.constant 0 : index
    %c0_0 = arith.constant 0 : index
    %0 = vector.load %arg6[%c0, %c0_0] : memref<32x480xf32, #tpu.memory_space<vmem>>, vector<32x480xf32>
    %c0_1 = arith.constant 0 : index
    %c0_2 = arith.constant 0 : index
    %1 = vector.load %arg8[%c0_1, %c0_2] : memref<16x96xf32, #tpu.memory_space<vmem>>, vector<16x96xf32>
    %c0_3 = arith.constant 0 : index
    %c0_4 = arith.constant 0 : index
    %c0_5 = arith.constant 0 : index
    %2 = vector.load %arg1[%c0_3, %c0_4, %c0_5] : memref<2x8x32xf32, #tpu.memory_space<vmem>>, vector<2x8x32xf32>
    %3 = vector.shape_cast %2 : vector<2x8x32xf32> to vector<16x32xf32>
    %c0_6 = arith.constant 0 : index
    %c0_7 = arith.constant 0 : index
    %c0_8 = arith.constant 0 : index
    %4 = vector.load %arg2[%c0_6, %c0_7, %c0_8] : memref<2x16x32xf32, #tpu.memory_space<vmem>>, vector<2x16x32xf32>
    %5 = vector.shape_cast %4 : vector<2x16x32xf32> to vector<32x32xf32>
    %c0_9 = arith.constant 0 : index
    %c0_10 = arith.constant 0 : index
    %c0_11 = arith.constant 0 : index
    %6 = vector.load %arg3[%c0_9, %c0_10, %c0_11] : memref<2x16x32xf32, #tpu.memory_space<vmem>>, vector<2x16x32xf32>
    %7 = vector.shape_cast %6 : vector<2x16x32xf32> to vector<32x32xf32>
    %c0_12 = arith.constant 0 : index
    %c0_13 = arith.constant 0 : index
    %c0_14 = arith.constant 0 : index
    %8 = vector.load %arg4[%c0_12, %c0_13, %c0_14] : memref<2x8x32xf32, #tpu.memory_space<vmem>>, vector<2x8x32xf32>
    %9 = vector.shape_cast %8 : vector<2x8x32xf32> to vector<16x32xf32>
    %c0_15 = arith.constant 0 : index
    %c0_16 = arith.constant 0 : index
    %c0_17 = arith.constant 0 : index
    %10 = vector.load %arg5[%c0_15, %c0_16, %c0_17] : memref<2x8x32xf32, #tpu.memory_space<vmem>>, vector<2x8x32xf32>
    %11 = vector.shape_cast %10 : vector<2x8x32xf32> to vector<16x32xf32>
    %12 = vector.extract_strided_slice %0 {offsets = [0, 0], sizes = [32, 96], strides = [1, 1]} : vector<32x480xf32> to vector<32x96xf32>
    %cst = arith.constant dense<0.000000e+00> : vector<16x96xf32>
    %13 = tpu.matmul %3, %12, %cst {dimension_numbers = #tpu.dot_dimension_numbers<[1], [0], [0], [1], [0, 0, 1, 1], [], []>} : vector<16x32xf32>, vector<32x96xf32>, vector<16x96xf32> -> vector<16x96xf32>
    %14 = vector.extract_strided_slice %1 {offsets = [0, 0], sizes = [1, 96], strides = [1, 1]} : vector<16x96xf32> to vector<1x96xf32>
    %15 = vector.broadcast %14 : vector<1x96xf32> to vector<16x96xf32>
    %16 = arith.addf %13, %15 : vector<16x96xf32>
    %17 = vector.extract_strided_slice %0 {offsets = [0, 96], sizes = [32, 64], strides = [1, 1]} : vector<32x480xf32> to vector<32x64xf32>
    %cst_18 = arith.constant dense<0.000000e+00> : vector<16x64xf32>
    %18 = tpu.matmul %9, %17, %cst_18 {dimension_numbers = #tpu.dot_dimension_numbers<[1], [0], [0], [1], [0, 0, 1, 1], [], []>} : vector<16x32xf32>, vector<32x64xf32>, vector<16x64xf32> -> vector<16x64xf32>
    %19 = vector.extract_strided_slice %1 {offsets = [1, 0], sizes = [1, 64], strides = [1, 1]} : vector<16x96xf32> to vector<1x64xf32>
    %20 = vector.broadcast %19 : vector<1x64xf32> to vector<16x64xf32>
    %21 = arith.addf %18, %20 : vector<16x64xf32>
    %22 = vector.extract_strided_slice %16 {offsets = [0, 0], sizes = [16, 32], strides = [1, 1]} : vector<16x96xf32> to vector<16x32xf32>
    %23 = vector.extract_strided_slice %21 {offsets = [0, 0], sizes = [16, 32], strides = [1, 1]} : vector<16x64xf32> to vector<16x32xf32>
    %24 = arith.addf %22, %23 : vector<16x32xf32>
    %25 = vector.shape_cast %24 : vector<16x32xf32> to vector<2x8x32xf32>
    %26 = vector.extract_strided_slice %16 {offsets = [0, 32], sizes = [16, 32], strides = [1, 1]} : vector<16x96xf32> to vector<16x32xf32>
    %27 = vector.extract_strided_slice %21 {offsets = [0, 32], sizes = [16, 32], strides = [1, 1]} : vector<16x64xf32> to vector<16x32xf32>
    %28 = arith.addf %26, %27 : vector<16x32xf32>
    %29 = vector.shape_cast %28 : vector<16x32xf32> to vector<2x8x32xf32>
    %30 = vector.extract_strided_slice %16 {offsets = [0, 64], sizes = [16, 32], strides = [1, 1]} : vector<16x96xf32> to vector<16x32xf32>
    %31 = vector.shape_cast %30 : vector<16x32xf32> to vector<2x8x32xf32>
    %32 = vector.extract_strided_slice %0 {offsets = [0, 160], sizes = [32, 32], strides = [1, 1]} : vector<32x480xf32> to vector<32x32xf32>
    %33 = vector.extract_strided_slice %1 {offsets = [2, 0], sizes = [1, 32], strides = [1, 1]} : vector<16x96xf32> to vector<1x32xf32>
    %34 = vector.extract_strided_slice %25 {offsets = [0, 0, 0], sizes = [2, 8, 8], strides = [1, 1, 1]} : vector<2x8x32xf32> to vector<2x8x8xf32>
    %cst_19 = arith.constant 0.353553385 : f32
    %35 = vector.broadcast %cst_19 : f32 to vector<2x8x8xf32>
    %36 = arith.mulf %34, %35 : vector<2x8x8xf32>
    %37 = vector.extract_strided_slice %29 {offsets = [0, 0, 0], sizes = [2, 8, 8], strides = [1, 1, 1]} : vector<2x8x32xf32> to vector<2x8x8xf32>
    "tpu.trace_start"() <{level = 10 : i32, message = "bqd,bkd->bqk"}> : () -> ()
    %cst_20 = arith.constant dense<0.000000e+00> : vector<2x8x8xf32>
    %38 = tpu.matmul %36, %37, %cst_20 {dimension_numbers = #tpu.dot_dimension_numbers<[2], [2], [1], [1], [0, 0, 0, 1, 1, 1], [0], [0]>} : vector<2x8x8xf32>, vector<2x8x8xf32>, vector<2x8x8xf32> -> vector<2x8x8xf32>
    "tpu.trace_stop"() : () -> ()
    %cst_21 = arith.constant dense<0xFF800000> : vector<2x8xf32>
    %39 = vector.multi_reduction <maximumf>, %38, %cst_21 [2] : vector<2x8x8xf32> to vector<2x8xf32>
    %40 = vector.shape_cast %39 : vector<2x8xf32> to vector<2x8x1xf32>
    %41 = vector.broadcast %40 : vector<2x8x1xf32> to vector<2x8x8xf32>
    %42 = arith.subf %38, %41 : vector<2x8x8xf32>
    %43 = math.exp %42 : vector<2x8x8xf32>
    %cst_22 = arith.constant dense<0.000000e+00> : vector<2x8xf32>
    %44 = vector.multi_reduction <add>, %43, %cst_22 [2] : vector<2x8x8xf32> to vector<2x8xf32>
    %45 = vector.shape_cast %44 : vector<2x8xf32> to vector<2x8x1xf32>
    %46 = vector.broadcast %45 : vector<2x8x1xf32> to vector<2x8x8xf32>
    %47 = arith.divf %43, %46 : vector<2x8x8xf32>
    %48 = vector.extract_strided_slice %31 {offsets = [0, 0, 0], sizes = [2, 8, 8], strides = [1, 1, 1]} : vector<2x8x32xf32> to vector<2x8x8xf32>
    "tpu.trace_start"() <{level = 10 : i32, message = "bqk,bkd->bqd"}> : () -> ()
    %cst_23 = arith.constant dense<0.000000e+00> : vector<2x8x8xf32>
    %49 = tpu.matmul %47, %48, %cst_23 {dimension_numbers = #tpu.dot_dimension_numbers<[2], [1], [1], [2], [0, 0, 0, 1, 1, 2], [0], [0]>} : vector<2x8x8xf32>, vector<2x8x8xf32>, vector<2x8x8xf32> -> vector<2x8x8xf32>
    "tpu.trace_stop"() : () -> ()
    %50 = vector.shape_cast %49 : vector<2x8x8xf32> to vector<16x8xf32>
    %51 = vector.extract_strided_slice %32 {offsets = [0, 0], sizes = [8, 32], strides = [1, 1]} : vector<32x32xf32> to vector<8x32xf32>
    %cst_24 = arith.constant dense<0.000000e+00> : vector<16x32xf32>
    %52 = tpu.matmul %50, %51, %cst_24 {dimension_numbers = #tpu.dot_dimension_numbers<[1], [0], [0], [1], [0, 0, 1, 1], [], []>} : vector<16x8xf32>, vector<8x32xf32>, vector<16x32xf32> -> vector<16x32xf32>
    %53 = vector.extract_strided_slice %25 {offsets = [0, 0, 8], sizes = [2, 8, 8], strides = [1, 1, 1]} : vector<2x8x32xf32> to vector<2x8x8xf32>
    %cst_25 = arith.constant 0.353553385 : f32
    %54 = vector.broadcast %cst_25 : f32 to vector<2x8x8xf32>
    %55 = arith.mulf %53, %54 : vector<2x8x8xf32>
    %56 = vector.extract_strided_slice %29 {offsets = [0, 0, 8], sizes = [2, 8, 8], strides = [1, 1, 1]} : vector<2x8x32xf32> to vector<2x8x8xf32>
    "tpu.trace_start"() <{level = 10 : i32, message = "bqd,bkd->bqk"}> : () -> ()
    %cst_26 = arith.constant dense<0.000000e+00> : vector<2x8x8xf32>
    %57 = tpu.matmul %55, %56, %cst_26 {dimension_numbers = #tpu.dot_dimension_numbers<[2], [2], [1], [1], [0, 0, 0, 1, 1, 1], [0], [0]>} : vector<2x8x8xf32>, vector<2x8x8xf32>, vector<2x8x8xf32> -> vector<2x8x8xf32>
    "tpu.trace_stop"() : () -> ()
    %cst_27 = arith.constant dense<0xFF800000> : vector<2x8xf32>
    %58 = vector.multi_reduction <maximumf>, %57, %cst_27 [2] : vector<2x8x8xf32> to vector<2x8xf32>
    %59 = vector.shape_cast %58 : vector<2x8xf32> to vector<2x8x1xf32>
    %60 = vector.broadcast %59 : vector<2x8x1xf32> to vector<2x8x8xf32>
    %61 = arith.subf %57, %60 : vector<2x8x8xf32>
    %62 = math.exp %61 : vector<2x8x8xf32>
    %cst_28 = arith.constant dense<0.000000e+00> : vector<2x8xf32>
    %63 = vector.multi_reduction <add>, %62, %cst_28 [2] : vector<2x8x8xf32> to vector<2x8xf32>
    %64 = vector.shape_cast %63 : vector<2x8xf32> to vector<2x8x1xf32>
    %65 = vector.broadcast %64 : vector<2x8x1xf32> to vector<2x8x8xf32>
    %66 = arith.divf %62, %65 : vector<2x8x8xf32>
    %67 = vector.extract_strided_slice %31 {offsets = [0, 0, 8], sizes = [2, 8, 8], strides = [1, 1, 1]} : vector<2x8x32xf32> to vector<2x8x8xf32>
    "tpu.trace_start"() <{level = 10 : i32, message = "bqk,bkd->bqd"}> : () -> ()
    %cst_29 = arith.constant dense<0.000000e+00> : vector<2x8x8xf32>
    %68 = tpu.matmul %66, %67, %cst_29 {dimension_numbers = #tpu.dot_dimension_numbers<[2], [1], [1], [2], [0, 0, 0, 1, 1, 2], [0], [0]>} : vector<2x8x8xf32>, vector<2x8x8xf32>, vector<2x8x8xf32> -> vector<2x8x8xf32>
    "tpu.trace_stop"() : () -> ()
    %69 = vector.shape_cast %68 : vector<2x8x8xf32> to vector<16x8xf32>
    %70 = vector.extract_strided_slice %32 {offsets = [8, 0], sizes = [8, 32], strides = [1, 1]} : vector<32x32xf32> to vector<8x32xf32>
    %cst_30 = arith.constant dense<0.000000e+00> : vector<16x32xf32>
    %71 = tpu.matmul %69, %70, %cst_30 {dimension_numbers = #tpu.dot_dimension_numbers<[1], [0], [0], [1], [0, 0, 1, 1], [], []>} : vector<16x8xf32>, vector<8x32xf32>, vector<16x32xf32> -> vector<16x32xf32>
    %72 = arith.addf %52, %71 : vector<16x32xf32>
    %73 = vector.extract_strided_slice %25 {offsets = [0, 0, 16], sizes = [2, 8, 8], strides = [1, 1, 1]} : vector<2x8x32xf32> to vector<2x8x8xf32>
    %cst_31 = arith.constant 0.353553385 : f32
    %74 = vector.broadcast %cst_31 : f32 to vector<2x8x8xf32>
    %75 = arith.mulf %73, %74 : vector<2x8x8xf32>
    %76 = vector.extract_strided_slice %29 {offsets = [0, 0, 16], sizes = [2, 8, 8], strides = [1, 1, 1]} : vector<2x8x32xf32> to vector<2x8x8xf32>
    "tpu.trace_start"() <{level = 10 : i32, message = "bqd,bkd->bqk"}> : () -> ()
    %cst_32 = arith.constant dense<0.000000e+00> : vector<2x8x8xf32>
    %77 = tpu.matmul %75, %76, %cst_32 {dimension_numbers = #tpu.dot_dimension_numbers<[2], [2], [1], [1], [0, 0, 0, 1, 1, 1], [0], [0]>} : vector<2x8x8xf32>, vector<2x8x8xf32>, vector<2x8x8xf32> -> vector<2x8x8xf32>
    "tpu.trace_stop"() : () -> ()
    %cst_33 = arith.constant dense<0xFF800000> : vector<2x8xf32>
    %78 = vector.multi_reduction <maximumf>, %77, %cst_33 [2] : vector<2x8x8xf32> to vector<2x8xf32>
    %79 = vector.shape_cast %78 : vector<2x8xf32> to vector<2x8x1xf32>
    %80 = vector.broadcast %79 : vector<2x8x1xf32> to vector<2x8x8xf32>
    %81 = arith.subf %77, %80 : vector<2x8x8xf32>
    %82 = math.exp %81 : vector<2x8x8xf32>
    %cst_34 = arith.constant dense<0.000000e+00> : vector<2x8xf32>
    %83 = vector.multi_reduction <add>, %82, %cst_34 [2] : vector<2x8x8xf32> to vector<2x8xf32>
    %84 = vector.shape_cast %83 : vector<2x8xf32> to vector<2x8x1xf32>
    %85 = vector.broadcast %84 : vector<2x8x1xf32> to vector<2x8x8xf32>
    %86 = arith.divf %82, %85 : vector<2x8x8xf32>
    %87 = vector.extract_strided_slice %31 {offsets = [0, 0, 16], sizes = [2, 8, 8], strides = [1, 1, 1]} : vector<2x8x32xf32> to vector<2x8x8xf32>
    "tpu.trace_start"() <{level = 10 : i32, message = "bqk,bkd->bqd"}> : () -> ()
    %cst_35 = arith.constant dense<0.000000e+00> : vector<2x8x8xf32>
    %88 = tpu.matmul %86, %87, %cst_35 {dimension_numbers = #tpu.dot_dimension_numbers<[2], [1], [1], [2], [0, 0, 0, 1, 1, 2], [0], [0]>} : vector<2x8x8xf32>, vector<2x8x8xf32>, vector<2x8x8xf32> -> vector<2x8x8xf32>
    "tpu.trace_stop"() : () -> ()
    %89 = vector.shape_cast %88 : vector<2x8x8xf32> to vector<16x8xf32>
    %90 = vector.extract_strided_slice %32 {offsets = [16, 0], sizes = [8, 32], strides = [1, 1]} : vector<32x32xf32> to vector<8x32xf32>
    %cst_36 = arith.constant dense<0.000000e+00> : vector<16x32xf32>
    %91 = tpu.matmul %89, %90, %cst_36 {dimension_numbers = #tpu.dot_dimension_numbers<[1], [0], [0], [1], [0, 0, 1, 1], [], []>} : vector<16x8xf32>, vector<8x32xf32>, vector<16x32xf32> -> vector<16x32xf32>
    %92 = arith.addf %72, %91 : vector<16x32xf32>
    %93 = vector.extract_strided_slice %25 {offsets = [0, 0, 24], sizes = [2, 8, 8], strides = [1, 1, 1]} : vector<2x8x32xf32> to vector<2x8x8xf32>
    %cst_37 = arith.constant 0.353553385 : f32
    %94 = vector.broadcast %cst_37 : f32 to vector<2x8x8xf32>
    %95 = arith.mulf %93, %94 : vector<2x8x8xf32>
    %96 = vector.extract_strided_slice %29 {offsets = [0, 0, 24], sizes = [2, 8, 8], strides = [1, 1, 1]} : vector<2x8x32xf32> to vector<2x8x8xf32>
    "tpu.trace_start"() <{level = 10 : i32, message = "bqd,bkd->bqk"}> : () -> ()
    %cst_38 = arith.constant dense<0.000000e+00> : vector<2x8x8xf32>
    %97 = tpu.matmul %95, %96, %cst_38 {dimension_numbers = #tpu.dot_dimension_numbers<[2], [2], [1], [1], [0, 0, 0, 1, 1, 1], [0], [0]>} : vector<2x8x8xf32>, vector<2x8x8xf32>, vector<2x8x8xf32> -> vector<2x8x8xf32>
    "tpu.trace_stop"() : () -> ()
    %cst_39 = arith.constant dense<0xFF800000> : vector<2x8xf32>
    %98 = vector.multi_reduction <maximumf>, %97, %cst_39 [2] : vector<2x8x8xf32> to vector<2x8xf32>
    %99 = vector.shape_cast %98 : vector<2x8xf32> to vector<2x8x1xf32>
    %100 = vector.broadcast %99 : vector<2x8x1xf32> to vector<2x8x8xf32>
    %101 = arith.subf %97, %100 : vector<2x8x8xf32>
    %102 = math.exp %101 : vector<2x8x8xf32>
    %cst_40 = arith.constant dense<0.000000e+00> : vector<2x8xf32>
    %103 = vector.multi_reduction <add>, %102, %cst_40 [2] : vector<2x8x8xf32> to vector<2x8xf32>
    %104 = vector.shape_cast %103 : vector<2x8xf32> to vector<2x8x1xf32>
    %105 = vector.broadcast %104 : vector<2x8x1xf32> to vector<2x8x8xf32>
    %106 = arith.divf %102, %105 : vector<2x8x8xf32>
    %107 = vector.extract_strided_slice %31 {offsets = [0, 0, 24], sizes = [2, 8, 8], strides = [1, 1, 1]} : vector<2x8x32xf32> to vector<2x8x8xf32>
    "tpu.trace_start"() <{level = 10 : i32, message = "bqk,bkd->bqd"}> : () -> ()
    %cst_41 = arith.constant dense<0.000000e+00> : vector<2x8x8xf32>
    %108 = tpu.matmul %106, %107, %cst_41 {dimension_numbers = #tpu.dot_dimension_numbers<[2], [1], [1], [2], [0, 0, 0, 1, 1, 2], [0], [0]>} : vector<2x8x8xf32>, vector<2x8x8xf32>, vector<2x8x8xf32> -> vector<2x8x8xf32>
    "tpu.trace_stop"() : () -> ()
    %109 = vector.shape_cast %108 : vector<2x8x8xf32> to vector<16x8xf32>
    %110 = vector.extract_strided_slice %32 {offsets = [24, 0], sizes = [8, 32], strides = [1, 1]} : vector<32x32xf32> to vector<8x32xf32>
    %cst_42 = arith.constant dense<0.000000e+00> : vector<16x32xf32>
    %111 = tpu.matmul %109, %110, %cst_42 {dimension_numbers = #tpu.dot_dimension_numbers<[1], [0], [0], [1], [0, 0, 1, 1], [], []>} : vector<16x8xf32>, vector<8x32xf32>, vector<16x32xf32> -> vector<16x32xf32>
    %112 = arith.addf %92, %111 : vector<16x32xf32>
    %113 = vector.broadcast %33 : vector<1x32xf32> to vector<16x32xf32>
    %114 = arith.addf %112, %113 : vector<16x32xf32>
    %115 = arith.addf %3, %114 : vector<16x32xf32>
    %cst_43 = arith.constant dense<0.000000e+00> : vector<16xf32>
    %116 = vector.multi_reduction <add>, %115, %cst_43 [1] : vector<16x32xf32> to vector<16xf32>
    %117 = vector.shape_cast %116 : vector<16xf32> to vector<16x1xf32>
    %cst_44 = arith.constant 3.200000e+01 : f32
    %118 = vector.broadcast %cst_44 : f32 to vector<16x1xf32>
    %119 = arith.divf %117, %118 : vector<16x1xf32>
    %120 = arith.mulf %115, %115 : vector<16x32xf32>
    %cst_45 = arith.constant dense<0.000000e+00> : vector<16xf32>
    %121 = vector.multi_reduction <add>, %120, %cst_45 [1] : vector<16x32xf32> to vector<16xf32>
    %122 = vector.shape_cast %121 : vector<16xf32> to vector<16x1xf32>
    %cst_46 = arith.constant 3.200000e+01 : f32
    %123 = vector.broadcast %cst_46 : f32 to vector<16x1xf32>
    %124 = arith.divf %122, %123 : vector<16x1xf32>
    %125 = arith.mulf %119, %119 : vector<16x1xf32>
    %126 = arith.subf %124, %125 : vector<16x1xf32>
    %127 = vector.broadcast %119 : vector<16x1xf32> to vector<16x32xf32>
    %128 = arith.subf %115, %127 : vector<16x32xf32>
    %cst_47 = arith.constant 9.99999974E-6 : f32
    %129 = vector.broadcast %cst_47 : f32 to vector<16x1xf32>
    %130 = arith.addf %126, %129 : vector<16x1xf32>
    %131 = math.rsqrt %130 : vector<16x1xf32>
    %132 = vector.broadcast %131 : vector<16x1xf32> to vector<16x32xf32>
    %133 = arith.mulf %128, %132 : vector<16x32xf32>
    %134 = vector.extract_strided_slice %1 {offsets = [10, 0], sizes = [1, 32], strides = [1, 1]} : vector<16x96xf32> to vector<1x32xf32>
    %135 = vector.broadcast %134 : vector<1x32xf32> to vector<16x32xf32>
    %136 = arith.mulf %133, %135 : vector<16x32xf32>
    %137 = vector.extract_strided_slice %1 {offsets = [11, 0], sizes = [1, 32], strides = [1, 1]} : vector<16x96xf32> to vector<1x32xf32>
    %138 = vector.broadcast %137 : vector<1x32xf32> to vector<16x32xf32>
    %139 = arith.addf %136, %138 : vector<16x32xf32>
    %140 = vector.extract_strided_slice %0 {offsets = [0, 192], sizes = [32, 32], strides = [1, 1]} : vector<32x480xf32> to vector<32x32xf32>
    %cst_48 = arith.constant dense<0.000000e+00> : vector<16x32xf32>
    %141 = tpu.matmul %139, %140, %cst_48 {dimension_numbers = #tpu.dot_dimension_numbers<[1], [0], [0], [1], [0, 0, 1, 1], [], []>} : vector<16x32xf32>, vector<32x32xf32>, vector<16x32xf32> -> vector<16x32xf32>
    %142 = vector.extract_strided_slice %0 {offsets = [0, 224], sizes = [32, 32], strides = [1, 1]} : vector<32x480xf32> to vector<32x32xf32>
    %cst_49 = arith.constant dense<0.000000e+00> : vector<16x32xf32>
    %143 = tpu.matmul %9, %142, %cst_49 {dimension_numbers = #tpu.dot_dimension_numbers<[1], [0], [0], [1], [0, 0, 1, 1], [], []>} : vector<16x32xf32>, vector<32x32xf32>, vector<16x32xf32> -> vector<16x32xf32>
    %144 = arith.addf %141, %143 : vector<16x32xf32>
    %145 = vector.extract_strided_slice %1 {offsets = [3, 0], sizes = [1, 32], strides = [1, 1]} : vector<16x96xf32> to vector<1x32xf32>
    %146 = vector.broadcast %145 : vector<1x32xf32> to vector<16x32xf32>
    %147 = arith.addf %144, %146 : vector<16x32xf32>
    %148 = vector.extract_strided_slice %0 {offsets = [0, 256], sizes = [32, 64], strides = [1, 1]} : vector<32x480xf32> to vector<32x64xf32>
    %cst_50 = arith.constant dense<0.000000e+00> : vector<32x64xf32>
    %149 = tpu.matmul %5, %148, %cst_50 {dimension_numbers = #tpu.dot_dimension_numbers<[1], [0], [0], [1], [0, 0, 1, 1], [], []>} : vector<32x32xf32>, vector<32x64xf32>, vector<32x64xf32> -> vector<32x64xf32>
    %150 = vector.extract_strided_slice %1 {offsets = [4, 0], sizes = [1, 64], strides = [1, 1]} : vector<16x96xf32> to vector<1x64xf32>
    %151 = vector.broadcast %150 : vector<1x64xf32> to vector<32x64xf32>
    %152 = arith.addf %149, %151 : vector<32x64xf32>
    %153 = vector.extract_strided_slice %0 {offsets = [0, 320], sizes = [32, 32], strides = [1, 1]} : vector<32x480xf32> to vector<32x32xf32>
    %cst_51 = arith.constant dense<0.000000e+00> : vector<32x32xf32>
    %154 = tpu.matmul %7, %153, %cst_51 {dimension_numbers = #tpu.dot_dimension_numbers<[1], [0], [0], [1], [0, 0, 1, 1], [], []>} : vector<32x32xf32>, vector<32x32xf32>, vector<32x32xf32> -> vector<32x32xf32>
    %155 = vector.extract_strided_slice %1 {offsets = [5, 0], sizes = [1, 32], strides = [1, 1]} : vector<16x96xf32> to vector<1x32xf32>
    %156 = vector.broadcast %155 : vector<1x32xf32> to vector<32x32xf32>
    %157 = arith.addf %154, %156 : vector<32x32xf32>
    %158 = vector.extract_strided_slice %152 {offsets = [0, 0], sizes = [32, 32], strides = [1, 1]} : vector<32x64xf32> to vector<32x32xf32>
    %159 = arith.addf %158, %157 : vector<32x32xf32>
    %160 = vector.extract_strided_slice %0 {offsets = [0, 352], sizes = [32, 32], strides = [1, 1]} : vector<32x480xf32> to vector<32x32xf32>
    %cst_52 = arith.constant dense<0.000000e+00> : vector<16x32xf32>
    %161 = tpu.matmul %11, %160, %cst_52 {dimension_numbers = #tpu.dot_dimension_numbers<[1], [0], [0], [1], [0, 0, 1, 1], [], []>} : vector<16x32xf32>, vector<32x32xf32>, vector<16x32xf32> -> vector<16x32xf32>
    %162 = vector.extract_strided_slice %1 {offsets = [6, 0], sizes = [1, 32], strides = [1, 1]} : vector<16x96xf32> to vector<1x32xf32>
    %163 = vector.broadcast %162 : vector<1x32xf32> to vector<16x32xf32>
    %164 = arith.addf %161, %163 : vector<16x32xf32>
    %165 = vector.shape_cast %147 : vector<16x32xf32> to vector<2x8x32xf32>
    %166 = vector.shape_cast %164 : vector<16x32xf32> to vector<2x8x32xf32>
    %167 = vector.shape_cast %159 : vector<32x32xf32> to vector<2x16x32xf32>
    %168 = vector.shape_cast %157 : vector<32x32xf32> to vector<2x16x32xf32>
    %169 = vector.extract_strided_slice %152 {offsets = [0, 32], sizes = [32, 32], strides = [1, 1]} : vector<32x64xf32> to vector<32x32xf32>
    %170 = vector.shape_cast %169 : vector<32x32xf32> to vector<2x16x32xf32>
    %171 = vector.extract_strided_slice %0 {offsets = [0, 384], sizes = [32, 32], strides = [1, 1]} : vector<32x480xf32> to vector<32x32xf32>
    %172 = vector.extract_strided_slice %1 {offsets = [7, 0], sizes = [1, 32], strides = [1, 1]} : vector<16x96xf32> to vector<1x32xf32>
    %173 = vector.extract_strided_slice %165 {offsets = [0, 0, 0], sizes = [2, 8, 8], strides = [1, 1, 1]} : vector<2x8x32xf32> to vector<2x8x8xf32>
    %cst_53 = arith.constant 2.500000e-01 : f32
    %174 = vector.broadcast %cst_53 : f32 to vector<2x8x8xf32>
    %175 = arith.mulf %173, %174 : vector<2x8x8xf32>
    %176 = vector.extract_strided_slice %167 {offsets = [0, 0, 0], sizes = [2, 16, 8], strides = [1, 1, 1]} : vector<2x16x32xf32> to vector<2x16x8xf32>
    "tpu.trace_start"() <{level = 10 : i32, message = "bqd,bkd->bqk"}> : () -> ()
    %cst_54 = arith.constant dense<0.000000e+00> : vector<2x8x16xf32>
    %177 = tpu.matmul %175, %176, %cst_54 {dimension_numbers = #tpu.dot_dimension_numbers<[2], [2], [1], [1], [0, 0, 0, 1, 1, 1], [0], [0]>} : vector<2x8x8xf32>, vector<2x16x8xf32>, vector<2x8x16xf32> -> vector<2x8x16xf32>
    "tpu.trace_stop"() : () -> ()
    %178 = vector.extract_strided_slice %166 {offsets = [0, 0, 0], sizes = [2, 8, 8], strides = [1, 1, 1]} : vector<2x8x32xf32> to vector<2x8x8xf32>
    %cst_55 = arith.constant 2.500000e-01 : f32
    %179 = vector.broadcast %cst_55 : f32 to vector<2x8x8xf32>
    %180 = arith.mulf %178, %179 : vector<2x8x8xf32>
    %181 = vector.extract_strided_slice %168 {offsets = [0, 0, 0], sizes = [2, 16, 8], strides = [1, 1, 1]} : vector<2x16x32xf32> to vector<2x16x8xf32>
    "tpu.trace_start"() <{level = 10 : i32, message = "bqd,bkd->bqk"}> : () -> ()
    %cst_56 = arith.constant dense<0.000000e+00> : vector<2x8x16xf32>
    %182 = tpu.matmul %180, %181, %cst_56 {dimension_numbers = #tpu.dot_dimension_numbers<[2], [2], [1], [1], [0, 0, 0, 1, 1, 1], [0], [0]>} : vector<2x8x8xf32>, vector<2x16x8xf32>, vector<2x8x16xf32> -> vector<2x8x16xf32>
    "tpu.trace_stop"() : () -> ()
    %183 = arith.addf %177, %182 : vector<2x8x16xf32>
    %cst_57 = arith.constant dense<0xFF800000> : vector<2x8xf32>
    %184 = vector.multi_reduction <maximumf>, %183, %cst_57 [2] : vector<2x8x16xf32> to vector<2x8xf32>
    %185 = vector.shape_cast %184 : vector<2x8xf32> to vector<2x8x1xf32>
    %186 = vector.broadcast %185 : vector<2x8x1xf32> to vector<2x8x16xf32>
    %187 = arith.subf %183, %186 : vector<2x8x16xf32>
    %188 = math.exp %187 : vector<2x8x16xf32>
    %cst_58 = arith.constant dense<0.000000e+00> : vector<2x8xf32>
    %189 = vector.multi_reduction <add>, %188, %cst_58 [2] : vector<2x8x16xf32> to vector<2x8xf32>
    %190 = vector.shape_cast %189 : vector<2x8xf32> to vector<2x8x1xf32>
    %191 = vector.broadcast %190 : vector<2x8x1xf32> to vector<2x8x16xf32>
    %192 = arith.divf %188, %191 : vector<2x8x16xf32>
    %193 = vector.extract_strided_slice %170 {offsets = [0, 0, 0], sizes = [2, 16, 8], strides = [1, 1, 1]} : vector<2x16x32xf32> to vector<2x16x8xf32>
    "tpu.trace_start"() <{level = 10 : i32, message = "bqk,bkd->bqd"}> : () -> ()
    %cst_59 = arith.constant dense<0.000000e+00> : vector<2x8x8xf32>
    %194 = tpu.matmul %192, %193, %cst_59 {dimension_numbers = #tpu.dot_dimension_numbers<[2], [1], [1], [2], [0, 0, 0, 1, 1, 2], [0], [0]>} : vector<2x8x16xf32>, vector<2x16x8xf32>, vector<2x8x8xf32> -> vector<2x8x8xf32>
    "tpu.trace_stop"() : () -> ()
    %195 = vector.shape_cast %194 : vector<2x8x8xf32> to vector<16x8xf32>
    %196 = vector.extract_strided_slice %171 {offsets = [0, 0], sizes = [8, 32], strides = [1, 1]} : vector<32x32xf32> to vector<8x32xf32>
    %cst_60 = arith.constant dense<0.000000e+00> : vector<16x32xf32>
    %197 = tpu.matmul %195, %196, %cst_60 {dimension_numbers = #tpu.dot_dimension_numbers<[1], [0], [0], [1], [0, 0, 1, 1], [], []>} : vector<16x8xf32>, vector<8x32xf32>, vector<16x32xf32> -> vector<16x32xf32>
    %198 = vector.extract_strided_slice %165 {offsets = [0, 0, 8], sizes = [2, 8, 8], strides = [1, 1, 1]} : vector<2x8x32xf32> to vector<2x8x8xf32>
    %cst_61 = arith.constant 2.500000e-01 : f32
    %199 = vector.broadcast %cst_61 : f32 to vector<2x8x8xf32>
    %200 = arith.mulf %198, %199 : vector<2x8x8xf32>
    %201 = vector.extract_strided_slice %167 {offsets = [0, 0, 8], sizes = [2, 16, 8], strides = [1, 1, 1]} : vector<2x16x32xf32> to vector<2x16x8xf32>
    "tpu.trace_start"() <{level = 10 : i32, message = "bqd,bkd->bqk"}> : () -> ()
    %cst_62 = arith.constant dense<0.000000e+00> : vector<2x8x16xf32>
    %202 = tpu.matmul %200, %201, %cst_62 {dimension_numbers = #tpu.dot_dimension_numbers<[2], [2], [1], [1], [0, 0, 0, 1, 1, 1], [0], [0]>} : vector<2x8x8xf32>, vector<2x16x8xf32>, vector<2x8x16xf32> -> vector<2x8x16xf32>
    "tpu.trace_stop"() : () -> ()
    %203 = vector.extract_strided_slice %166 {offsets = [0, 0, 8], sizes = [2, 8, 8], strides = [1, 1, 1]} : vector<2x8x32xf32> to vector<2x8x8xf32>
    %cst_63 = arith.constant 2.500000e-01 : f32
    %204 = vector.broadcast %cst_63 : f32 to vector<2x8x8xf32>
    %205 = arith.mulf %203, %204 : vector<2x8x8xf32>
    %206 = vector.extract_strided_slice %168 {offsets = [0, 0, 8], sizes = [2, 16, 8], strides = [1, 1, 1]} : vector<2x16x32xf32> to vector<2x16x8xf32>
    "tpu.trace_start"() <{level = 10 : i32, message = "bqd,bkd->bqk"}> : () -> ()
    %cst_64 = arith.constant dense<0.000000e+00> : vector<2x8x16xf32>
    %207 = tpu.matmul %205, %206, %cst_64 {dimension_numbers = #tpu.dot_dimension_numbers<[2], [2], [1], [1], [0, 0, 0, 1, 1, 1], [0], [0]>} : vector<2x8x8xf32>, vector<2x16x8xf32>, vector<2x8x16xf32> -> vector<2x8x16xf32>
    "tpu.trace_stop"() : () -> ()
    %208 = arith.addf %202, %207 : vector<2x8x16xf32>
    %cst_65 = arith.constant dense<0xFF800000> : vector<2x8xf32>
    %209 = vector.multi_reduction <maximumf>, %208, %cst_65 [2] : vector<2x8x16xf32> to vector<2x8xf32>
    %210 = vector.shape_cast %209 : vector<2x8xf32> to vector<2x8x1xf32>
    %211 = vector.broadcast %210 : vector<2x8x1xf32> to vector<2x8x16xf32>
    %212 = arith.subf %208, %211 : vector<2x8x16xf32>
    %213 = math.exp %212 : vector<2x8x16xf32>
    %cst_66 = arith.constant dense<0.000000e+00> : vector<2x8xf32>
    %214 = vector.multi_reduction <add>, %213, %cst_66 [2] : vector<2x8x16xf32> to vector<2x8xf32>
    %215 = vector.shape_cast %214 : vector<2x8xf32> to vector<2x8x1xf32>
    %216 = vector.broadcast %215 : vector<2x8x1xf32> to vector<2x8x16xf32>
    %217 = arith.divf %213, %216 : vector<2x8x16xf32>
    %218 = vector.extract_strided_slice %170 {offsets = [0, 0, 8], sizes = [2, 16, 8], strides = [1, 1, 1]} : vector<2x16x32xf32> to vector<2x16x8xf32>
    "tpu.trace_start"() <{level = 10 : i32, message = "bqk,bkd->bqd"}> : () -> ()
    %cst_67 = arith.constant dense<0.000000e+00> : vector<2x8x8xf32>
    %219 = tpu.matmul %217, %218, %cst_67 {dimension_numbers = #tpu.dot_dimension_numbers<[2], [1], [1], [2], [0, 0, 0, 1, 1, 2], [0], [0]>} : vector<2x8x16xf32>, vector<2x16x8xf32>, vector<2x8x8xf32> -> vector<2x8x8xf32>
    "tpu.trace_stop"() : () -> ()
    %220 = vector.shape_cast %219 : vector<2x8x8xf32> to vector<16x8xf32>
    %221 = vector.extract_strided_slice %171 {offsets = [8, 0], sizes = [8, 32], strides = [1, 1]} : vector<32x32xf32> to vector<8x32xf32>
    %cst_68 = arith.constant dense<0.000000e+00> : vector<16x32xf32>
    %222 = tpu.matmul %220, %221, %cst_68 {dimension_numbers = #tpu.dot_dimension_numbers<[1], [0], [0], [1], [0, 0, 1, 1], [], []>} : vector<16x8xf32>, vector<8x32xf32>, vector<16x32xf32> -> vector<16x32xf32>
    %223 = arith.addf %197, %222 : vector<16x32xf32>
    %224 = vector.extract_strided_slice %165 {offsets = [0, 0, 16], sizes = [2, 8, 8], strides = [1, 1, 1]} : vector<2x8x32xf32> to vector<2x8x8xf32>
    %cst_69 = arith.constant 2.500000e-01 : f32
    %225 = vector.broadcast %cst_69 : f32 to vector<2x8x8xf32>
    %226 = arith.mulf %224, %225 : vector<2x8x8xf32>
    %227 = vector.extract_strided_slice %167 {offsets = [0, 0, 16], sizes = [2, 16, 8], strides = [1, 1, 1]} : vector<2x16x32xf32> to vector<2x16x8xf32>
    "tpu.trace_start"() <{level = 10 : i32, message = "bqd,bkd->bqk"}> : () -> ()
    %cst_70 = arith.constant dense<0.000000e+00> : vector<2x8x16xf32>
    %228 = tpu.matmul %226, %227, %cst_70 {dimension_numbers = #tpu.dot_dimension_numbers<[2], [2], [1], [1], [0, 0, 0, 1, 1, 1], [0], [0]>} : vector<2x8x8xf32>, vector<2x16x8xf32>, vector<2x8x16xf32> -> vector<2x8x16xf32>
    "tpu.trace_stop"() : () -> ()
    %229 = vector.extract_strided_slice %166 {offsets = [0, 0, 16], sizes = [2, 8, 8], strides = [1, 1, 1]} : vector<2x8x32xf32> to vector<2x8x8xf32>
    %cst_71 = arith.constant 2.500000e-01 : f32
    %230 = vector.broadcast %cst_71 : f32 to vector<2x8x8xf32>
    %231 = arith.mulf %229, %230 : vector<2x8x8xf32>
    %232 = vector.extract_strided_slice %168 {offsets = [0, 0, 16], sizes = [2, 16, 8], strides = [1, 1, 1]} : vector<2x16x32xf32> to vector<2x16x8xf32>
    "tpu.trace_start"() <{level = 10 : i32, message = "bqd,bkd->bqk"}> : () -> ()
    %cst_72 = arith.constant dense<0.000000e+00> : vector<2x8x16xf32>
    %233 = tpu.matmul %231, %232, %cst_72 {dimension_numbers = #tpu.dot_dimension_numbers<[2], [2], [1], [1], [0, 0, 0, 1, 1, 1], [0], [0]>} : vector<2x8x8xf32>, vector<2x16x8xf32>, vector<2x8x16xf32> -> vector<2x8x16xf32>
    "tpu.trace_stop"() : () -> ()
    %234 = arith.addf %228, %233 : vector<2x8x16xf32>
    %cst_73 = arith.constant dense<0xFF800000> : vector<2x8xf32>
    %235 = vector.multi_reduction <maximumf>, %234, %cst_73 [2] : vector<2x8x16xf32> to vector<2x8xf32>
    %236 = vector.shape_cast %235 : vector<2x8xf32> to vector<2x8x1xf32>
    %237 = vector.broadcast %236 : vector<2x8x1xf32> to vector<2x8x16xf32>
    %238 = arith.subf %234, %237 : vector<2x8x16xf32>
    %239 = math.exp %238 : vector<2x8x16xf32>
    %cst_74 = arith.constant dense<0.000000e+00> : vector<2x8xf32>
    %240 = vector.multi_reduction <add>, %239, %cst_74 [2] : vector<2x8x16xf32> to vector<2x8xf32>
    %241 = vector.shape_cast %240 : vector<2x8xf32> to vector<2x8x1xf32>
    %242 = vector.broadcast %241 : vector<2x8x1xf32> to vector<2x8x16xf32>
    %243 = arith.divf %239, %242 : vector<2x8x16xf32>
    %244 = vector.extract_strided_slice %170 {offsets = [0, 0, 16], sizes = [2, 16, 8], strides = [1, 1, 1]} : vector<2x16x32xf32> to vector<2x16x8xf32>
    "tpu.trace_start"() <{level = 10 : i32, message = "bqk,bkd->bqd"}> : () -> ()
    %cst_75 = arith.constant dense<0.000000e+00> : vector<2x8x8xf32>
    %245 = tpu.matmul %243, %244, %cst_75 {dimension_numbers = #tpu.dot_dimension_numbers<[2], [1], [1], [2], [0, 0, 0, 1, 1, 2], [0], [0]>} : vector<2x8x16xf32>, vector<2x16x8xf32>, vector<2x8x8xf32> -> vector<2x8x8xf32>
    "tpu.trace_stop"() : () -> ()
    %246 = vector.shape_cast %245 : vector<2x8x8xf32> to vector<16x8xf32>
    %247 = vector.extract_strided_slice %171 {offsets = [16, 0], sizes = [8, 32], strides = [1, 1]} : vector<32x32xf32> to vector<8x32xf32>
    %cst_76 = arith.constant dense<0.000000e+00> : vector<16x32xf32>
    %248 = tpu.matmul %246, %247, %cst_76 {dimension_numbers = #tpu.dot_dimension_numbers<[1], [0], [0], [1], [0, 0, 1, 1], [], []>} : vector<16x8xf32>, vector<8x32xf32>, vector<16x32xf32> -> vector<16x32xf32>
    %249 = arith.addf %223, %248 : vector<16x32xf32>
    %250 = vector.extract_strided_slice %165 {offsets = [0, 0, 24], sizes = [2, 8, 8], strides = [1, 1, 1]} : vector<2x8x32xf32> to vector<2x8x8xf32>
    %cst_77 = arith.constant 2.500000e-01 : f32
    %251 = vector.broadcast %cst_77 : f32 to vector<2x8x8xf32>
    %252 = arith.mulf %250, %251 : vector<2x8x8xf32>
    %253 = vector.extract_strided_slice %167 {offsets = [0, 0, 24], sizes = [2, 16, 8], strides = [1, 1, 1]} : vector<2x16x32xf32> to vector<2x16x8xf32>
    "tpu.trace_start"() <{level = 10 : i32, message = "bqd,bkd->bqk"}> : () -> ()
    %cst_78 = arith.constant dense<0.000000e+00> : vector<2x8x16xf32>
    %254 = tpu.matmul %252, %253, %cst_78 {dimension_numbers = #tpu.dot_dimension_numbers<[2], [2], [1], [1], [0, 0, 0, 1, 1, 1], [0], [0]>} : vector<2x8x8xf32>, vector<2x16x8xf32>, vector<2x8x16xf32> -> vector<2x8x16xf32>
    "tpu.trace_stop"() : () -> ()
    %255 = vector.extract_strided_slice %166 {offsets = [0, 0, 24], sizes = [2, 8, 8], strides = [1, 1, 1]} : vector<2x8x32xf32> to vector<2x8x8xf32>
    %cst_79 = arith.constant 2.500000e-01 : f32
    %256 = vector.broadcast %cst_79 : f32 to vector<2x8x8xf32>
    %257 = arith.mulf %255, %256 : vector<2x8x8xf32>
    %258 = vector.extract_strided_slice %168 {offsets = [0, 0, 24], sizes = [2, 16, 8], strides = [1, 1, 1]} : vector<2x16x32xf32> to vector<2x16x8xf32>
    "tpu.trace_start"() <{level = 10 : i32, message = "bqd,bkd->bqk"}> : () -> ()
    %cst_80 = arith.constant dense<0.000000e+00> : vector<2x8x16xf32>
    %259 = tpu.matmul %257, %258, %cst_80 {dimension_numbers = #tpu.dot_dimension_numbers<[2], [2], [1], [1], [0, 0, 0, 1, 1, 1], [0], [0]>} : vector<2x8x8xf32>, vector<2x16x8xf32>, vector<2x8x16xf32> -> vector<2x8x16xf32>
    "tpu.trace_stop"() : () -> ()
    %260 = arith.addf %254, %259 : vector<2x8x16xf32>
    %cst_81 = arith.constant dense<0xFF800000> : vector<2x8xf32>
    %261 = vector.multi_reduction <maximumf>, %260, %cst_81 [2] : vector<2x8x16xf32> to vector<2x8xf32>
    %262 = vector.shape_cast %261 : vector<2x8xf32> to vector<2x8x1xf32>
    %263 = vector.broadcast %262 : vector<2x8x1xf32> to vector<2x8x16xf32>
    %264 = arith.subf %260, %263 : vector<2x8x16xf32>
    %265 = math.exp %264 : vector<2x8x16xf32>
    %cst_82 = arith.constant dense<0.000000e+00> : vector<2x8xf32>
    %266 = vector.multi_reduction <add>, %265, %cst_82 [2] : vector<2x8x16xf32> to vector<2x8xf32>
    %267 = vector.shape_cast %266 : vector<2x8xf32> to vector<2x8x1xf32>
    %268 = vector.broadcast %267 : vector<2x8x1xf32> to vector<2x8x16xf32>
    %269 = arith.divf %265, %268 : vector<2x8x16xf32>
    %270 = vector.extract_strided_slice %170 {offsets = [0, 0, 24], sizes = [2, 16, 8], strides = [1, 1, 1]} : vector<2x16x32xf32> to vector<2x16x8xf32>
    "tpu.trace_start"() <{level = 10 : i32, message = "bqk,bkd->bqd"}> : () -> ()
    %cst_83 = arith.constant dense<0.000000e+00> : vector<2x8x8xf32>
    %271 = tpu.matmul %269, %270, %cst_83 {dimension_numbers = #tpu.dot_dimension_numbers<[2], [1], [1], [2], [0, 0, 0, 1, 1, 2], [0], [0]>} : vector<2x8x16xf32>, vector<2x16x8xf32>, vector<2x8x8xf32> -> vector<2x8x8xf32>
    "tpu.trace_stop"() : () -> ()
    %272 = vector.shape_cast %271 : vector<2x8x8xf32> to vector<16x8xf32>
    %273 = vector.extract_strided_slice %171 {offsets = [24, 0], sizes = [8, 32], strides = [1, 1]} : vector<32x32xf32> to vector<8x32xf32>
    %cst_84 = arith.constant dense<0.000000e+00> : vector<16x32xf32>
    %274 = tpu.matmul %272, %273, %cst_84 {dimension_numbers = #tpu.dot_dimension_numbers<[1], [0], [0], [1], [0, 0, 1, 1], [], []>} : vector<16x8xf32>, vector<8x32xf32>, vector<16x32xf32> -> vector<16x32xf32>
    %275 = arith.addf %249, %274 : vector<16x32xf32>
    %276 = vector.broadcast %172 : vector<1x32xf32> to vector<16x32xf32>
    %277 = arith.addf %275, %276 : vector<16x32xf32>
    %278 = arith.addf %139, %277 : vector<16x32xf32>
    %cst_85 = arith.constant dense<0.000000e+00> : vector<16xf32>
    %279 = vector.multi_reduction <add>, %278, %cst_85 [1] : vector<16x32xf32> to vector<16xf32>
    %280 = vector.shape_cast %279 : vector<16xf32> to vector<16x1xf32>
    %cst_86 = arith.constant 3.200000e+01 : f32
    %281 = vector.broadcast %cst_86 : f32 to vector<16x1xf32>
    %282 = arith.divf %280, %281 : vector<16x1xf32>
    %283 = arith.mulf %278, %278 : vector<16x32xf32>
    %cst_87 = arith.constant dense<0.000000e+00> : vector<16xf32>
    %284 = vector.multi_reduction <add>, %283, %cst_87 [1] : vector<16x32xf32> to vector<16xf32>
    %285 = vector.shape_cast %284 : vector<16xf32> to vector<16x1xf32>
    %cst_88 = arith.constant 3.200000e+01 : f32
    %286 = vector.broadcast %cst_88 : f32 to vector<16x1xf32>
    %287 = arith.divf %285, %286 : vector<16x1xf32>
    %288 = arith.mulf %282, %282 : vector<16x1xf32>
    %289 = arith.subf %287, %288 : vector<16x1xf32>
    %290 = vector.broadcast %282 : vector<16x1xf32> to vector<16x32xf32>
    %291 = arith.subf %278, %290 : vector<16x32xf32>
    %cst_89 = arith.constant 9.99999974E-6 : f32
    %292 = vector.broadcast %cst_89 : f32 to vector<16x1xf32>
    %293 = arith.addf %289, %292 : vector<16x1xf32>
    %294 = math.rsqrt %293 : vector<16x1xf32>
    %295 = vector.broadcast %294 : vector<16x1xf32> to vector<16x32xf32>
    %296 = arith.mulf %291, %295 : vector<16x32xf32>
    %297 = vector.extract_strided_slice %1 {offsets = [12, 0], sizes = [1, 32], strides = [1, 1]} : vector<16x96xf32> to vector<1x32xf32>
    %298 = vector.broadcast %297 : vector<1x32xf32> to vector<16x32xf32>
    %299 = arith.mulf %296, %298 : vector<16x32xf32>
    %300 = vector.extract_strided_slice %1 {offsets = [13, 0], sizes = [1, 32], strides = [1, 1]} : vector<16x96xf32> to vector<1x32xf32>
    %301 = vector.broadcast %300 : vector<1x32xf32> to vector<16x32xf32>
    %302 = arith.addf %299, %301 : vector<16x32xf32>
    %303 = vector.extract_strided_slice %0 {offsets = [0, 416], sizes = [32, 64], strides = [1, 1]} : vector<32x480xf32> to vector<32x64xf32>
    %cst_90 = arith.constant dense<0.000000e+00> : vector<16x64xf32>
    %304 = tpu.matmul %302, %303, %cst_90 {dimension_numbers = #tpu.dot_dimension_numbers<[1], [0], [0], [1], [0, 0, 1, 1], [], []>} : vector<16x32xf32>, vector<32x64xf32>, vector<16x64xf32> -> vector<16x64xf32>
    %305 = vector.extract_strided_slice %1 {offsets = [8, 0], sizes = [1, 64], strides = [1, 1]} : vector<16x96xf32> to vector<1x64xf32>
    %306 = vector.broadcast %305 : vector<1x64xf32> to vector<16x64xf32>
    %307 = arith.addf %304, %306 : vector<16x64xf32>
    %cst_91 = arith.constant 0.000000e+00 : f32
    %308 = vector.broadcast %cst_91 : f32 to vector<16x64xf32>
    %309 = arith.maximumf %307, %308 : vector<16x64xf32>
    %c0_92 = arith.constant 0 : index
    %c0_93 = arith.constant 0 : index
    %310 = vector.load %arg7[%c0_92, %c0_93] : memref<64x32xf32, #tpu.memory_space<vmem>>, vector<64x32xf32>
    %cst_94 = arith.constant dense<0.000000e+00> : vector<16x32xf32>
    %311 = tpu.matmul %309, %310, %cst_94 {dimension_numbers = #tpu.dot_dimension_numbers<[1], [0], [0], [1], [0, 0, 1, 1], [], []>} : vector<16x64xf32>, vector<64x32xf32>, vector<16x32xf32> -> vector<16x32xf32>
    %312 = vector.extract_strided_slice %1 {offsets = [9, 0], sizes = [1, 32], strides = [1, 1]} : vector<16x96xf32> to vector<1x32xf32>
    %313 = vector.broadcast %312 : vector<1x32xf32> to vector<16x32xf32>
    %314 = arith.addf %311, %313 : vector<16x32xf32>
    %315 = arith.addf %302, %314 : vector<16x32xf32>
    %cst_95 = arith.constant dense<0.000000e+00> : vector<16xf32>
    %316 = vector.multi_reduction <add>, %315, %cst_95 [1] : vector<16x32xf32> to vector<16xf32>
    %317 = vector.shape_cast %316 : vector<16xf32> to vector<16x1xf32>
    %cst_96 = arith.constant 3.200000e+01 : f32
    %318 = vector.broadcast %cst_96 : f32 to vector<16x1xf32>
    %319 = arith.divf %317, %318 : vector<16x1xf32>
    %320 = arith.mulf %315, %315 : vector<16x32xf32>
    %cst_97 = arith.constant dense<0.000000e+00> : vector<16xf32>
    %321 = vector.multi_reduction <add>, %320, %cst_97 [1] : vector<16x32xf32> to vector<16xf32>
    %322 = vector.shape_cast %321 : vector<16xf32> to vector<16x1xf32>
    %cst_98 = arith.constant 3.200000e+01 : f32
    %323 = vector.broadcast %cst_98 : f32 to vector<16x1xf32>
    %324 = arith.divf %322, %323 : vector<16x1xf32>
    %325 = arith.mulf %319, %319 : vector<16x1xf32>
    %326 = arith.subf %324, %325 : vector<16x1xf32>
    %327 = vector.broadcast %319 : vector<16x1xf32> to vector<16x32xf32>
    %328 = arith.subf %315, %327 : vector<16x32xf32>
    %cst_99 = arith.constant 9.99999974E-6 : f32
    %329 = vector.broadcast %cst_99 : f32 to vector<16x1xf32>
    %330 = arith.addf %326, %329 : vector<16x1xf32>
    %331 = math.rsqrt %330 : vector<16x1xf32>
    %332 = vector.broadcast %331 : vector<16x1xf32> to vector<16x32xf32>
    %333 = arith.mulf %328, %332 : vector<16x32xf32>
    %334 = vector.extract_strided_slice %1 {offsets = [14, 0], sizes = [1, 32], strides = [1, 1]} : vector<16x96xf32> to vector<1x32xf32>
    %335 = vector.broadcast %334 : vector<1x32xf32> to vector<16x32xf32>
    %336 = arith.mulf %333, %335 : vector<16x32xf32>
    %337 = vector.extract_strided_slice %1 {offsets = [15, 0], sizes = [1, 32], strides = [1, 1]} : vector<16x96xf32> to vector<1x32xf32>
    %338 = vector.broadcast %337 : vector<1x32xf32> to vector<16x32xf32>
    %339 = arith.addf %336, %338 : vector<16x32xf32>
    %340 = vector.shape_cast %339 : vector<16x32xf32> to vector<2x8x32xf32>
    %c0_100 = arith.constant 0 : index
    %c0_101 = arith.constant 0 : index
    %c0_102 = arith.constant 0 : index
    %341 = vector.load %arg9[%c0_100, %c0_101, %c0_102] : memref<2x8x32xf32, #tpu.memory_space<vmem>>, vector<2x8x32xf32>
    tpu.vector_store %arg9[%c0_100, %c0_101, %c0_102], %340 {strides = array<i32>} : memref<2x8x32xf32, #tpu.memory_space<vmem>>, vector<2x8x32xf32>,
    return
  }
  func.func @transform_0(%arg0: i32) -> (i32, i32, i32) {
    %c0_i32 = arith.constant 0 : i32
    %c0_i32_0 = arith.constant 0 : i32
    %c0_i32_1 = arith.constant 0 : i32
    %c0_i32_2 = arith.constant 0 : i32
    return %c0_i32, %c0_i32_0, %c0_i32_1 : i32, i32, i32
  }
  func.func @transform_1(%arg0: i32) -> (i32, i32, i32) {
    %c0_i32 = arith.constant 0 : i32
    %c0_i32_0 = arith.constant 0 : i32
    %c0_i32_1 = arith.constant 0 : i32
    %c0_i32_2 = arith.constant 0 : i32
    return %c0_i32, %c0_i32_0, %c0_i32_1 : i32, i32, i32
  }
  func.func @transform_2(%arg0: i32) -> (i32, i32, i32) {
    %c0_i32 = arith.constant 0 : i32
    %c0_i32_0 = arith.constant 0 : i32
    %c0_i32_1 = arith.constant 0 : i32
    %c0_i32_2 = arith.constant 0 : i32
    return %c0_i32, %c0_i32_0, %c0_i32_1 : i32, i32, i32
  }
  func.func @transform_3(%arg0: i32) -> (i32, i32, i32) {
    %c0_i32 = arith.constant 0 : i32
    %c0_i32_0 = arith.constant 0 : i32
    %c0_i32_1 = arith.constant 0 : i32
    %c0_i32_2 = arith.constant 0 : i32
    return %c0_i32, %c0_i32_0, %c0_i32_1 : i32, i32, i32
  }
  func.func @transform_4(%arg0: i32) -> (i32, i32, i32) {
    %c0_i32 = arith.constant 0 : i32
    %c0_i32_0 = arith.constant 0 : i32
    %c0_i32_1 = arith.constant 0 : i32
    %c0_i32_2 = arith.constant 0 : i32
    return %c0_i32, %c0_i32_0, %c0_i32_1 : i32, i32, i32
  }
  func.func @transform_5(%arg0: i32) -> (i32, i32) {
    %c0_i32 = arith.constant 0 : i32
    %c0_i32_0 = arith.constant 0 : i32
    %c0_i32_1 = arith.constant 0 : i32
    return %c0_i32, %c0_i32_0 : i32, i32
  }
  func.func @transform_6(%arg0: i32) -> (i32, i32) {
    %c0_i32 = arith.constant 0 : i32
    %c0_i32_0 = arith.constant 0 : i32
    %c0_i32_1 = arith.constant 0 : i32
    return %c0_i32, %c0_i32_0 : i32, i32
  }
  func.func @transform_7(%arg0: i32) -> (i32, i32) {
    %c0_i32 = arith.constant 0 : i32
    %c0_i32_0 = arith.constant 0 : i32
    %c0_i32_1 = arith.constant 0 : i32
    return %c0_i32, %c0_i32_0 : i32, i32
  }
  func.func @transform_8(%arg0: i32) -> (i32, i32, i32) {
    %c0_i32 = arith.constant 0 : i32
    %c0_i32_0 = arith.constant 0 : i32
    %c0_i32_1 = arith.constant 0 : i32
    %c0_i32_2 = arith.constant 0 : i32
    return %c0_i32, %c0_i32_0, %c0_i32_1 : i32, i32, i32
  }
}

</mosaic_0001>

<bundles_post_ra>
// kernel: decoder_layer_forward_pallas.1
= control target key start
LH: loop header
LB: loop body
LE: loop exit
PB: predicated region body
PF: predicated region fallthrough
CT: control target
= control target key end

     0   :  { %s5934_s9 = smov 32   ;;  %vm65_vm0 = vcmask 261120   ;;  %v61_v24 = vlaneseq  ;;  %v5935_v28 = vmov 0.0   ;;  %vm5936_vm1 = vmmov 0   ;;  %s5938_s10 = smov 64   ;;  %s6866_s5 = inlined_call_operand.vmem [shape: f32[32,480], index: 5, kind: input, shape index: {}]   ;;  %s6867_s0 = inlined_call_operand.vmem [shape: f32[2,8,32], index: 0, kind: input, shape index: {}]   ;;  %s6868_s3 = inlined_call_operand.vmem [shape: f32[2,8,32], index: 3, kind: input, shape index: {}]   ;;  %s6869_s7 = inlined_call_operand.vmem [shape: f32[16,96], index: 7, kind: input, shape index: {}]   ;;  %s6870_s1 = inlined_call_operand.vmem [shape: f32[2,16,32], index: 1, kind: input, shape index: {}]   ;;  %s6871_s4 = inlined_call_operand.vmem [shape: f32[2,8,32], index: 4, kind: input, shape index: {}]   ;;  %s6872_s2 = inlined_call_operand.vmem [shape: f32[2,16,32], index: 2, kind: input, shape index: {}]   ;;  %s6873_s6 = inlined_call_operand.vmem [shape: f32[64,32], index: 6, kind: input, shape index: {}]   ;;  %s6874_s8 = inlined_call_operand.vmem [shape: f32[2,8,32], index: 8, kind: output, shape index: {}]  }
   0x1   :  { %v41_v0 = vld [vmem:[%s6866_s5 + $0x60] sm:$0xff]  ;;  %v6004_v2 = vld [vmem:[%s6866_s5 + $0x68] sm:$0xff]  ;;  %vm271_vm2 = vcmask 64512   ;;  %s5939_s11 = smov 88   ;;  %s5940_s12 = smov 120   ;;  %vm2799_vm3 = vcmask 130048  }
   0x2   :  { %v37_v1 = vld [vmem:[%s6866_s5 + $0x40] sm:$0xff]  ;;  %171 = vrot.lane.b32.xlu0 %v41_v0, %s5934_s9  ;;  %v6009_v3 = vld [vmem:[%s6866_s5 + $0x48] sm:$0xff]  ;;  %5441 = vmatprep.subr.mxu0 %v41_v0  ;;  %v6081_v25 = vshrl.u32 %v61_v24, 7  ;;  %s5941_s13 = smov 56   ;;  %s5942_s14 = smov 80   ;;  %vm5001_vm4 = vcmask 523264  }
   0x3   :  { %167 = vrot.lane.b32.xlu1 %v37_v1, %s5934_s9  ;;  %5442 = vmatpush3.msra.mxu0 %v41_v0  ;;  %v6014_v4 = vld [vmem:[%s6867_s0] sm:$0xff]  ;;  %v6030_v6 = vld [vmem:[%s6866_s5 + $0x28] sm:$0xff]  ;;  %s5943_s15 = smov 112   ;;  %s5944_s16 = smov 48  }
   0x4   :  { %v6019_v5 = vld [vmem:[%s6868_s3] sm:$0xff]  ;;  %5443 = vmatprep.subr.mxu0 %v37_v1  ;;  %5449 = vmatprep.mubr.msk.f32.mxu0 %vm65_vm0, %v6014_v4  ;;  %v6046_v9 = vld [vmem:[%s6867_s0 + $0x8] sm:$0xff]  ;;  %v63_v26 = vsub.s32 0, %v6081_v25  ;;  %v149_v29 = vsub.s32 1, %v6081_v25  ;;  %s5945_s17 = smov 72   ;;  %s5946_s18 = smov 104  }
   0x5   :  { %v33_v7 = vld [vmem:[%s6866_s5 + $0x20] sm:$0xff]  ;;  %5444 = vmatpush3.msra.mxu0 %v37_v1  ;;  %5460 = vmatprep.mubr.msk.f32.mxu1 %vm65_vm0, %v6019_v5  ;;  %v6051_v10 = vld [vmem:[%s6866_s5 + $0x8] sm:$0xff]  ;;  %s5947_s19 = smov 40  }
   0x6   :  { %173 = vrot.lane.b32.xlu0 %v6004_v2, %s5934_s9  ;;  %5445 = vmatprep.subr.mxu0 %v33_v7  ;;  %v29_v8 = vld [vmem:[%s6866_s5] sm:$0xff]  ;;  %v6077_v23 = vld [vmem:[%s6868_s3 + $0x8] sm:$0xff]  ;;  %s5937_s3 = smov 96  }
   0x7   :  { %169 = vrot.lane.b32.xlu1 %v6009_v3, %s5934_s9  ;;  %5446 = vmatpush3.msra.mxu0 %v33_v7  ;;  %v6087_v27 = vld [vmem:[%s6869_s7] sm:$0xff] }
   0x8   :  { %5447 = vmatprep.subr.mxu0 %v29_v8  ;;  %v64_v30 = vrot.slane %v6087_v27, %v63_v26  ;;  %v150_v32 = vrot.slane %v6087_v27, %v149_v29 }
   0x9   :  { %5448 = vmatpush3.msra.mxu0 %v29_v8 }
   0xa   :  { %163 = vrot.lane.b32.xlu0 %v33_v7, %s5934_s9  ;;  %5450 = vmatmul.mubr.msk.f32.vlgmr.msra.gmra.mxu0 %vm65_vm0, %v6046_v9 }
   0xb   :  { %165 = vrot.lane.b32.xlu1 %v6030_v6, %s5934_s9  ;;  %5463 = vmatprep.subr.mxu0 %v5935_v28 }
   0xc   :  { %5465 = vmatprep.mubr.msk.f32.mxu0 %vm5936_vm1, %v5935_v28 }
   0xe   :  { %159 = vrot.lane.b32.xlu0 %v29_v8, %s5934_s9 }
   0xf   :  { %161 = vrot.lane.b32.xlu1 %v6051_v10, %s5934_s9 }
  0x74   :  { %v172_v11 = vpop.permute.xlu0 %171 }
  0x75   :  { %v168_v12 = vpop.permute.xlu1 %167 }
  0x78   :  { %v6058_v13 = vpop.permute.xlu0 %173 }
  0x79   :  { %v6060_v14 = vpop.permute.xlu1 %169  ;;  %v178_v15 = vsel %vm65_vm0, %v172_v11, %v6058_v13 }
  0x7a   :  { %5452 = vmatprep.subr.mxu1 %v178_v15  ;;  %v177_v16 = vsel %vm65_vm0, %v168_v12, %v6060_v14 }
  0x7b   :  { %5453 = vmatpush3.msra.mxu1 %v178_v15 }
  0x7c   :  { %5454 = vmatprep.subr.mxu1 %v177_v16  ;;  %v164_v18 = vpop.permute.xlu0 %163 }
  0x7d   :  { %v6066_v17 = vpop.permute.xlu1 %165  ;;  %5455 = vmatpush3.msra.mxu1 %v177_v16 }
  0x7e   :  { %v176_v19 = vsel %vm65_vm0, %v164_v18, %v6066_v17 }
  0x7f   :  { %5456 = vmatprep.subr.mxu1 %v176_v19 }
  0x80   :  { %5457 = vmatpush3.msra.mxu1 %v176_v19  ;;  %v160_v21 = vpop.permute.xlu0 %159 }
  0x81   :  { %v6070_v20 = vpop.permute.xlu1 %161 }
  0x82   :  { %v175_v22 = vsel %vm65_vm0, %v160_v21, %v6070_v20 }
  0x83   :  { %5458 = vmatprep.subr.mxu1 %v175_v22 }
  0x84   :  { %5459 = vmatpush3.msra.mxu1 %v175_v22 }
  0x85   :  { %5461 = vmatmul.mubr.msk.f32.vlgmr.msra.gmra.mxu1 %vm65_vm0, %v6077_v23  ;;  %5478 = vmatprep.subr.mxu1 %v5935_v28 }
  0x86   :  { %5480 = vmatprep.mubr.msk.f32.mxu1 %vm5936_vm1, %v5935_v28 }
  0xca   :  { %v5451_v31 = vpop.f32.mrf.mxu0 }
  0xcb   :  { %v6102_v33 = vadd.f32 %v5451_v31, %v64_v30 }
  0xcc   :  { %v138_v34 = vpop.f32.mrf.mxu0 }
  0xcd   :  { %v6104_v38 = vadd.f32 %v138_v34, %v64_v30 }
 0x145   :  { %v5462_v35 = vpop.f32.mrf.mxu1 }
 0x146   :  { %v261_v36 = vadd.f32 %v5462_v35, %v150_v32 }
 0x147   :  { %v255_v37 = vpop.f32.mrf.mxu1 }
 0x148   :  { %v6107_v39 = vadd.f32 %v261_v36, %v6102_v33  ;;  %v256_v40 = vadd.f32 %v255_v37, %v150_v32 }
 0x14a   :  { %v6110_v41 = vadd.f32 %v256_v40, %v6104_v38  ;;  %348 = vrot.lane.b32.xlu1 %v6107_v39, %s5937_s3  ;;  %v6127_v45 = vmul.f32 0.35355338, %v6107_v39 }
 0x14c   :  { %269 = vrot.lane.b32.xlu0 %v6110_v41, %s5937_s3  ;;  %v6118_v43 = vmul.f32 0.35355338, %v6110_v41 }
 0x1bc   :  { %v349_v44 = vpop.permute.xlu1 %348 }
 0x1be   :  { %v270_v42 = vpop.permute.xlu0 %269 }
 0x1bf   :  { %5464 = vmatpush3.xpose.msk.msra.mxu0 %vm271_vm2, %v270_v42 }
 0x1c0   :  { %5468 = vmatprep.subr.mxu0 %v5935_v28 }
 0x1c2   :  { %5466 = vmatmul.mubr.msk.f32.vlgmr.msra.gmra.mxu0 %vm271_vm2, %v6118_v43 }
 0x1c3   :  { %5469 = vmatpush3.xpose.msk.msra.mxu0 %vm271_vm2, %v349_v44  ;;  %5470 = vmatprep.mubr.msk.f32.mxu0 %vm5936_vm1, %v5935_v28 }
 0x1c4   :  { %5473 = vmatprep.subr.mxu0 %v5935_v28 }
 0x1c6   :  { %5471 = vmatmul.mubr.msk.f32.vlgmr.msra.gmra.mxu0 %vm271_vm2, %v6127_v45 }
 0x1c7   :  { %5475 = vmatprep.mubr.msk.f32.mxu0 %vm5936_vm1, %v5935_v28 }
 0x282   :  { %v343_v46 = vpop.f32.mrf.mxu0 }
 0x283   :  { %v425_v47 = vsel %vm271_vm2, %v343_v46, -inf }
 0x284   :  { %426 = vmax.xlane.f32.xlu0 %v425_v47  ;;  %v5467_v48 = vpop.f32.mrf.mxu0 }
 0x286   :  { %v421_v49 = vpop.f32.mrf.mxu0 }
 0x287   :  { %v428_v50 = vsel %vm271_vm2, %v421_v49, -inf }
 0x288   :  { %429 = vmax.xlane.f32.xlu1 %v428_v50  ;;  %v5472_v51 = vpop.f32.mrf.mxu0 }
 0x299   :  { %448 = vrot.lane.b32.xlu1 %v6104_v38, %s5938_s10 }
 0x29a   :  { %525 = vrot.lane.b32.xlu0 %v6102_v33, %s5938_s10 }
 0x29d   :  { %603 = vrot.lane.b32.xlu1 %v6110_v41, %s5939_s11 }
 0x2a1   :  { %681 = vrot.lane.b32.xlu1 %v6107_v39, %s5939_s11 }
 0x2a5   :  { %679 = vrot.lane.b32.xlu1 %v6127_v45, %s5940_s12 }
 0x30d   :  { %v427_v52 = vpop.xlane.xlu0 %426 }
 0x30e   :  { %v431_v53 = vsub.f32 %v343_v46, %v427_v52 }
 0x310   :  { %v433_v54 = vmul.f32 1.442695, %v431_v53 }
 0x311   :  { %v526_v55 = vpop.permute.xlu0 %525  ;;  %v430_v56 = vpop.xlane.xlu1 %429 }
 0x312   :  { %5856 = vpow2.f32 %v433_v54  ;;  %v432_v57 = vsub.f32 %v421_v49, %v430_v56  ;;  %5479 = vmatpush3.msra.mxu1 %v526_v55 }
 0x313   :  { %5488 = vmatprep.subr.mxu1 %v5935_v28 }
 0x314   :  { %v435_v58 = vmul.f32 1.442695, %v432_v57 }
 0x315   :  { %v449_v59 = vpop.permute.xlu1 %448 }
 0x316   :  { %5858 = vpow2.f32 %v435_v58  ;;  %5474 = vmatpush3.msra.mxu0 %v449_v59 }
 0x317   :  { %5483 = vmatprep.subr.mxu0 %v5935_v28 }
 0x319   :  { %v604_v7 = vpop.permute.xlu1 %603 }
 0x31d   :  { %v682_v15 = vpop.permute.xlu1 %681 }
 0x31f   :  { %v5857_v60 = vpop.eup %5856 }
 0x320   :  { %v437_v61 = vsel %vm271_vm2, %v5857_v60, 0.0 }
 0x321   :  { %438 = vadd.xlane.f32.xlu0 %v437_v61  ;;  %v680_v19 = vpop.permute.xlu1 %679 }
 0x323   :  { %v5859_v62 = vpop.eup %5858 }
 0x324   :  { %v440_v63 = vsel %vm271_vm2, %v5859_v62, 0.0 }
 0x325   :  { %441 = vadd.xlane.f32.xlu0 %v440_v63 }
 0x33b   :  { %601 = vrot.lane.b32.xlu0 %v6118_v43, %s5940_s12 }
 0x3aa   :  { %v439_v0 = vpop.xlane.xlu0 %438 }
 0x3ab   :  { %5860 = vrcp.f32 %v439_v0 }
 0x3ae   :  { %v442_v1 = vpop.xlane.xlu0 %441 }
 0x3af   :  { %5862 = vrcp.f32 %v442_v1 }
 0x3b2   :  { %v602_v18 = vpop.permute.xlu0 %601 }
 0x3b8   :  { %v5861_v8 = vpop.eup %5860 }
 0x3b9   :  { %v444_v11 = vmul.f32 %v5861_v8, %v5857_v60 }
 0x3bb   :  { %5476 = vmatmul.mubr.msk.f32.vlgmr.msra.gmra.mxu0 %vm271_vm2, %v444_v11 }
 0x3bc   :  { %v5863_v12 = vpop.eup %5862  ;;  %5484 = vmatpush3.xpose.msk.msra.mxu0 %vm271_vm2, %v604_v7  ;;  %5485 = vmatprep.mubr.msk.f32.mxu0 %vm5936_vm1, %v5935_v28 }
 0x3bd   :  { %v446_v16 = vmul.f32 %v5863_v12, %v5859_v62  ;;  %5493 = vmatprep.subr.mxu0 %v5935_v28 }
 0x3bf   :  { %5481 = vmatmul.mubr.msk.f32.vlgmr.msra.gmra.mxu1 %vm271_vm2, %v446_v16  ;;  %5486 = vmatmul.mubr.msk.f32.vlgmr.msra.gmra.mxu0 %vm271_vm2, %v602_v18 }
 0x3c0   :  { %5489 = vmatpush3.xpose.msk.msra.mxu1 %vm271_vm2, %v682_v15  ;;  %5490 = vmatprep.mubr.msk.f32.mxu1 %vm5936_vm1, %v5935_v28 }
 0x3c1   :  { %5498 = vmatprep.subr.mxu1 %v5935_v28  ;;  %5495 = vmatprep.mubr.msk.f32.mxu0 %vm5936_vm1, %v5935_v28 }
 0x3c3   :  { %5491 = vmatmul.mubr.msk.f32.vlgmr.msra.gmra.mxu1 %vm271_vm2, %v680_v19 }
 0x3c4   :  { %5500 = vmatprep.mubr.msk.f32.mxu1 %vm5936_vm1, %v5935_v28 }
 0x47b   :  { %v520_v21 = vpop.f32.mrf.mxu0 }
 0x47d   :  { %v5477_v22 = vpop.f32.mrf.mxu0 }
 0x47f   :  { %v597_v24 = vpop.f32.mrf.mxu1  ;;  %v675_v30 = vpop.f32.mrf.mxu0 }
 0x480   :  { %v757_v31 = vsel %vm271_vm2, %v675_v30, -inf }
 0x481   :  { %v5482_v32 = vpop.f32.mrf.mxu1  ;;  %758 = vmax.xlane.f32.xlu0 %v757_v31  ;;  %v5487_v34 = vpop.f32.mrf.mxu0 }
 0x483   :  { %v753_v35 = vpop.f32.mrf.mxu1 }
 0x484   :  { %v760_v36 = vsel %vm271_vm2, %v753_v35, -inf }
 0x485   :  { %761 = vmax.xlane.f32.xlu1 %v760_v36  ;;  %v5492_v37 = vpop.f32.mrf.mxu1 }
 0x496   :  { %779 = vrot.lane.b32.xlu1 %v6104_v38, %s5941_s13 }
 0x49a   :  { %931 = vrot.lane.b32.xlu1 %v6030_v6, %s5937_s3 }
 0x49e   :  { %1015 = vrot.lane.b32.xlu1 %v6051_v10, %s5937_s3 }
 0x4a2   :  { %1179 = vrot.lane.b32.xlu1 %v6107_v39, %s5942_s14 }
 0x4a6   :  { %1177 = vrot.lane.b32.xlu1 %v6127_v45, %s5943_s15 }
 0x50a   :  { %v759_v40 = vpop.xlane.xlu0 %758 }
 0x50b   :  { %v763_v42 = vsub.f32 %v675_v30, %v759_v40 }
 0x50d   :  { %v765_v44 = vmul.f32 1.442695, %v763_v42 }
 0x50e   :  { %v762_v46 = vpop.xlane.xlu1 %761 }
 0x50f   :  { %5864 = vpow2.f32 %v765_v44  ;;  %v764_v47 = vsub.f32 %v753_v35, %v762_v46 }
 0x511   :  { %v767_v48 = vmul.f32 1.442695, %v764_v47 }
 0x512   :  { %v780_v49 = vpop.permute.xlu1 %779 }
 0x513   :  { %5866 = vpow2.f32 %v767_v48  ;;  %5494 = vmatpush3.msra.mxu0 %v780_v49 }
 0x516   :  { %v932_v50 = vpop.permute.xlu1 %931 }
 0x517   :  { %5503 = vmatprep.subr.mxu0 %v932_v50 }
 0x51a   :  { %v1016_v58 = vpop.permute.xlu1 %1015 }
 0x51c   :  { %v5865_v51 = vpop.eup %5864 }
 0x51d   :  { %v769_v52 = vsel %vm271_vm2, %v5865_v51, 0.0 }
 0x51e   :  { %770 = vadd.xlane.f32.xlu0 %v769_v52  ;;  %v1180_v63 = vpop.permute.xlu1 %1179 }
 0x520   :  { %v5867_v53 = vpop.eup %5866 }
 0x521   :  { %v772_v54 = vsel %vm271_vm2, %v5867_v53, 0.0 }
 0x522   :  { %773 = vadd.xlane.f32.xlu0 %v772_v54  ;;  %v1178_v0 = vpop.permute.xlu1 %1177 }
 0x538   :  { %855 = vrot.lane.b32.xlu0 %v6102_v33, %s5941_s13 }
 0x53c   :  { %1101 = vrot.lane.b32.xlu0 %v6110_v41, %s5942_s14 }
 0x540   :  { %1099 = vrot.lane.b32.xlu0 %v6118_v43, %s5943_s15 }
 0x5a7   :  { %v771_v55 = vpop.xlane.xlu0 %770 }
 0x5a8   :  { %5868 = vrcp.f32 %v771_v55 }
 0x5ab   :  { %v774_v56 = vpop.xlane.xlu0 %773 }
 0x5ac   :  { %5870 = vrcp.f32 %v774_v56 }
 0x5af   :  { %v856_v57 = vpop.permute.xlu0 %855 }
 0x5b0   :  { %5499 = vmatpush3.msra.mxu1 %v856_v57 }
 0x5b1   :  { %5508 = vmatprep.subr.mxu1 %v1016_v58 }
 0x5b3   :  { %v1102_v7 = vpop.permute.xlu0 %1101 }
 0x5b5   :  { %v5869_v59 = vpop.eup %5868 }
 0x5b6   :  { %v776_v60 = vmul.f32 %v5869_v59, %v5865_v51 }
 0x5b7   :  { %v1100_v15 = vpop.permute.xlu0 %1099 }
 0x5b8   :  { %5496 = vmatmul.mubr.msk.f32.vlgmr.msra.gmra.mxu0 %vm271_vm2, %v776_v60 }
 0x5b9   :  { %v5871_v61 = vpop.eup %5870  ;;  %5504 = vmatpush3.msra.mxu0 %v932_v50 }
 0x5ba   :  { %v778_v62 = vmul.f32 %v5871_v61, %v5867_v53  ;;  %5513 = vmatprep.subr.mxu0 %v5935_v28 }
 0x5bc   :  { %5501 = vmatmul.mubr.msk.f32.vlgmr.msra.gmra.mxu1 %vm271_vm2, %v778_v62 }
 0x5bd   :  { %5510 = vmatprep.mubr.msk.f32.mxu1 %vm271_vm2, %v520_v21  ;;  %5509 = vmatpush3.msra.mxu1 %v1016_v58 }
 0x5be   :  { %5518 = vmatprep.subr.mxu1 %v5935_v28 }
 0x5c0   :  { %5511 = vmatmul.mubr.msk.f32.vlgmr.msra.gmra.mxu1 %vm271_vm2, %v597_v24 }
 0x5c1   :  { %5519 = vmatpush3.xpose.msk.msra.mxu1 %vm271_vm2, %v1180_v63  ;;  %5520 = vmatprep.mubr.msk.f32.mxu1 %vm5936_vm1, %v5935_v28 }
 0x5c2   :  { %5528 = vmatprep.subr.mxu1 %v5935_v28 }
 0x5c4   :  { %5521 = vmatmul.mubr.msk.f32.vlgmr.msra.gmra.mxu1 %vm271_vm2, %v1178_v0 }
 0x5c5   :  { %5530 = vmatprep.mubr.msk.f32.mxu1 %vm5936_vm1, %v5935_v28 }
 0x678   :  { %v851_v1 = vpop.f32.mrf.mxu0 }
 0x679   :  { %5505 = vmatprep.mubr.msk.f32.mxu0 %vm271_vm2, %v851_v1 }
 0x67a   :  { %v5497_v8 = vpop.f32.mrf.mxu0 }
 0x67c   :  { %v927_v11 = vpop.f32.mrf.mxu1 }
 0x67d   :  { %5506 = vmatmul.mubr.msk.f32.vlgmr.msra.gmra.mxu0 %vm271_vm2, %v927_v11 }
 0x67e   :  { %5514 = vmatpush3.xpose.msk.msra.mxu0 %vm271_vm2, %v1102_v7  ;;  %v5502_v12 = vpop.f32.mrf.mxu1  ;;  %5515 = vmatprep.mubr.msk.f32.mxu0 %vm5936_vm1, %v5935_v28 }
 0x67f   :  { %5523 = vmatprep.subr.mxu0 %v5935_v28 }
 0x680   :  { %v6205_v16 = vpop.f32.mrf.mxu1 }
 0x681   :  { %5516 = vmatmul.mubr.msk.f32.vlgmr.msra.gmra.mxu0 %vm271_vm2, %v1100_v15 }
 0x682   :  { %v6208_v18 = vpop.f32.mrf.mxu1  ;;  %5525 = vmatprep.mubr.msk.f32.mxu0 %vm5936_vm1, %v5935_v28 }
 0x684   :  { %v1251_v19 = vpop.f32.mrf.mxu1 }
 0x685   :  { %v1258_v21 = vsel %vm271_vm2, %v1251_v19, -inf }
 0x686   :  { %1259 = vmax.xlane.f32.xlu1 %v1258_v21  ;;  %v5522_v22 = vpop.f32.mrf.mxu1 }
 0x697   :  { %1277 = vrot.lane.b32.xlu1 %v6104_v38, %s5944_s16 }
 0x69b   :  { %1429 = vrot.lane.b32.xlu1 %v6009_v3, %s5937_s3 }
 0x69f   :  { %1517 = vrot.lane.b32.xlu1 %v6110_v41, %s5945_s17 }
 0x6a3   :  { %1515 = vrot.lane.b32.xlu1 %v6118_v43, %s5946_s18 }
 0x70f   :  { %v1260_v24 = vpop.xlane.xlu1 %1259 }
 0x710   :  { %v1262_v32 = vsub.f32 %v1251_v19, %v1260_v24 }
 0x712   :  { %v1265_v34 = vmul.f32 1.442695, %v1262_v32 }
 0x713   :  { %v1278_v30 = vpop.permute.xlu1 %1277 }
 0x714   :  { %5524 = vmatpush3.msra.mxu0 %v1278_v30  ;;  %5872 = vpow2.f32 %v1265_v34 }
 0x717   :  { %v1430_v31 = vpop.permute.xlu1 %1429 }
 0x718   :  { %5533 = vmatprep.subr.mxu0 %v1430_v31 }
 0x71b   :  { %v1518_v53 = vpop.permute.xlu1 %1517 }
 0x721   :  { %v5873_v42 = vpop.eup %5872 }
 0x722   :  { %v1270_v44 = vsel %vm271_vm2, %v5873_v42, 0.0 }
 0x73d   :  { %v5507_v35 = vpop.f32.mrf.mxu0 }
 0x73e   :  { %v1096_v12 = vadd.f32 %v6205_v16, %v5507_v35 }
 0x73f   :  { %v6221_v36 = vpop.f32.mrf.mxu0 }
 0x740   :  { %v1091_v19 = vadd.f32 %v6208_v18, %v6221_v36 }
 0x741   :  { %v1173_v37 = vpop.f32.mrf.mxu0 }
 0x742   :  { %v1255_v40 = vsel %vm271_vm2, %v1173_v37, -inf }
 0x743   :  { %1256 = vmax.xlane.f32.xlu0 %v1255_v40  ;;  %v5517_v41 = vpop.f32.mrf.mxu0 }
 0x747   :  { %1271 = vadd.xlane.f32.xlu0 %v1270_v44 }
 0x7cc   :  { %v1257_v43 = vpop.xlane.xlu0 %1256 }
 0x7cd   :  { %v1261_v46 = vsub.f32 %v1173_v37, %v1257_v43 }
 0x7cf   :  { %v1263_v47 = vmul.f32 1.442695, %v1261_v46 }
 0x7d0   :  { %v1272_v50 = vpop.xlane.xlu0 %1271 }
 0x7d1   :  { %5874 = vpow2.f32 %v1263_v47 }
 0x7d2   :  { %5876 = vrcp.f32 %v1272_v50 }
 0x7de   :  { %v5875_v48 = vpop.eup %5874 }
 0x7df   :  { %v1267_v49 = vsel %vm271_vm2, %v5875_v48, 0.0  ;;  %v5877_v52 = vpop.eup %5876 }
 0x7e0   :  { %1268 = vadd.xlane.f32.xlu0 %v1267_v49  ;;  %v1276_v55 = vmul.f32 %v5877_v52, %v5873_v42 }
 0x7f6   :  { %1353 = vrot.lane.b32.xlu0 %v6102_v33, %s5944_s16 }
 0x7fa   :  { %1595 = vrot.lane.b32.xlu0 %v6107_v39, %s5945_s17  ;;  %v1516_v39 = vpop.permute.xlu1 %1515 }
 0x7fe   :  { %1593 = vrot.lane.b32.xlu0 %v6127_v45, %s5946_s18 }
 0x869   :  { %v1269_v51 = vpop.xlane.xlu0 %1268 }
 0x86a   :  { %5878 = vrcp.f32 %v1269_v51  ;;  %v1933_v51 = vsub.s32 2, %v6081_v25 }
 0x86c   :  { %v1934_v52 = vrot.slane %v6087_v27, %v1933_v51 }
 0x86d   :  { %v1354_v54 = vpop.permute.xlu0 %1353 }
 0x86e   :  { %5529 = vmatpush3.msra.mxu1 %v1354_v54 }
 0x86f   :  { %5531 = vmatmul.mubr.msk.f32.vlgmr.msra.gmra.mxu1 %vm271_vm2, %v1276_v55  ;;  %5538 = vmatprep.subr.mxu1 %v5935_v28 }
 0x870   :  { %5539 = vmatpush3.xpose.msk.msra.mxu1 %vm271_vm2, %v1518_v53  ;;  %5540 = vmatprep.mubr.msk.f32.mxu1 %vm5936_vm1, %v5935_v28 }
 0x871   :  { %5548 = vmatprep.subr.mxu1 %v5935_v28  ;;  %v1596_v62 = vpop.permute.xlu0 %1595 }
 0x873   :  { %5541 = vmatmul.mubr.msk.f32.vlgmr.msra.gmra.mxu1 %vm271_vm2, %v1516_v39 }
 0x874   :  { %5550 = vmatprep.mubr.msk.f32.mxu1 %vm5936_vm1, %v5935_v28 }
 0x875   :  { %v1594_v1 = vpop.permute.xlu0 %1593 }
 0x877   :  { %v5879_v45 = vpop.eup %5878 }
 0x878   :  { %v1274_v56 = vmul.f32 %v5879_v45, %v5875_v48 }
 0x87a   :  { %5526 = vmatmul.mubr.msk.f32.vlgmr.msra.gmra.mxu0 %vm271_vm2, %v1274_v56 }
 0x87b   :  { %5534 = vmatpush3.msra.mxu0 %v1430_v31 }
 0x87c   :  { %5543 = vmatprep.subr.mxu0 %v5935_v28 }
 0x92f   :  { %v1425_v57 = vpop.f32.mrf.mxu1 }
 0x931   :  { %v5532_v58 = vpop.f32.mrf.mxu1 }
 0x933   :  { %v1589_v59 = vpop.f32.mrf.mxu1 }
 0x934   :  { %v1671_v60 = vsel %vm271_vm2, %v1589_v59, -inf }
 0x935   :  { %1672 = vmax.xlane.f32.xlu1 %v1671_v60  ;;  %v5542_v61 = vpop.f32.mrf.mxu1 }
 0x93a   :  { %v1349_v63 = vpop.f32.mrf.mxu0 }
 0x93b   :  { %5535 = vmatprep.mubr.msk.f32.mxu0 %vm271_vm2, %v1349_v63  ;;  %v52_v63 = vld [vmem:[%s6870_s1 + $0x18] sm:$0xff] }
 0x93c   :  { %v5527_v0 = vpop.f32.mrf.mxu0  ;;  %5536 = vmatmul.mubr.msk.f32.vlgmr.msra.gmra.mxu0 %vm271_vm2, %v1425_v57 }
 0x93d   :  { %5544 = vmatpush3.xpose.msk.msra.mxu0 %vm271_vm2, %v1596_v62  ;;  %5545 = vmatprep.mubr.msk.f32.mxu0 %vm5936_vm1, %v5935_v28  ;;  %v59_v0 = vld [vmem:[%s6871_s4] sm:$0xff] }
 0x93e   :  { %5553 = vmatprep.subr.mxu0 %v5935_v28 }
 0x940   :  { %5546 = vmatmul.mubr.msk.f32.vlgmr.msra.gmra.mxu0 %vm271_vm2, %v1594_v1 }
 0x941   :  { %5555 = vmatprep.mubr.msk.f32.mxu0 %vm5936_vm1, %v5935_v28 }
 0x9be   :  { %v1673_v7 = vpop.xlane.xlu1 %1672 }
 0x9bf   :  { %v1677_v8 = vsub.f32 %v1589_v59, %v1673_v7 }
 0x9c1   :  { %v1679_v11 = vmul.f32 1.442695, %v1677_v8 }
 0x9c3   :  { %5880 = vpow2.f32 %v1679_v11 }
 0x9d0   :  { %v5881_v32 = vpop.eup %5880 }
 0x9d1   :  { %v1683_v37 = vsel %vm271_vm2, %v5881_v32, 0.0 }
 0x9fc   :  { %v5537_v15 = vpop.f32.mrf.mxu0 }
 0x9fd   :  { %v6256_v21 = vadd.f32 %v5537_v15, %v1096_v12 }
 0x9fe   :  { %v1504_v22 = vpop.f32.mrf.mxu0 }
 0x9ff   :  { %v6258_v24 = vadd.f32 %v1504_v22, %v1091_v19 }
 0xa00   :  { %v1667_v30 = vpop.f32.mrf.mxu0 }
 0xa01   :  { %v1674_v31 = vsel %vm271_vm2, %v1667_v30, -inf }
 0xa02   :  { %1675 = vmax.xlane.f32.xlu0 %v1674_v31  ;;  %v5547_v34 = vpop.f32.mrf.mxu0 }
 0xa06   :  { %1684 = vadd.xlane.f32.xlu0 %v1683_v37 }
 0xa1c   :  { %1693 = vrot.lane.b32.xlu0 %v6104_v38, %s5947_s19 }
 0xa8b   :  { %v1676_v16 = vpop.xlane.xlu0 %1675 }
 0xa8c   :  { %v1678_v35 = vsub.f32 %v1667_v30, %v1676_v16 }
 0xa8e   :  { %v1681_v18 = vmul.f32 1.442695, %v1678_v35 }
 0xa8f   :  { %v1685_v36 = vpop.xlane.xlu0 %1684 }
 0xa90   :  { %5882 = vpow2.f32 %v1681_v18 }
 0xa91   :  { %5884 = vrcp.f32 %v1685_v36 }
 0xa93   :  { %v1694_v40 = vpop.permute.xlu0 %1693 }
 0xa94   :  { %5549 = vmatpush3.msra.mxu1 %v1694_v40 }
 0xa9d   :  { %v5883_v42 = vpop.eup %5882 }
 0xa9e   :  { %v5885_v41 = vpop.eup %5884  ;;  %v1686_v44 = vsel %vm271_vm2, %v5883_v42, 0.0 }
 0xa9f   :  { %1687 = vadd.xlane.f32.xlu1 %v1686_v44  ;;  %v1690_v43 = vmul.f32 %v5885_v41, %v5881_v32  ;;  %v46_v44 = vld [vmem:[%s6869_s7 + $0x8] sm:$0xff] }
 0xaa1   :  { %5551 = vmatmul.mubr.msk.f32.vlgmr.msra.gmra.mxu1 %vm271_vm2, %v1690_v43 }
 0xab0   :  { %1769 = vrot.lane.b32.xlu1 %v6102_v33, %s5947_s19 }
 0xab4   :  { %1845 = vrot.lane.b32.xlu1 %v6004_v2, %s5937_s3 }
 0xab8   :  { %2067 = vrot.lane.b32.xlu1 %v6004_v2, %s5938_s10 }
 0xb28   :  { %v1688_v38 = vpop.xlane.xlu1 %1687 }
 0xb29   :  { %5886 = vrcp.f32 %v1688_v38 }
 0xb2c   :  { %v1770_v46 = vpop.permute.xlu1 %1769 }
 0xb2d   :  { %5554 = vmatpush3.msra.mxu0 %v1770_v46 }
 0xb2e   :  { %5563 = vmatprep.subr.mxu0 %v6058_v13 }
 0xb30   :  { %v1846_v47 = vpop.permute.xlu1 %1845 }
 0xb31   :  { %5558 = vmatprep.subr.mxu1 %v1846_v47 }
 0xb32   :  { %5559 = vmatpush3.msra.mxu1 %v1846_v47  ;;  %v1973_v47 = vrot.slane %v46_v44, %v1933_v51 }
 0xb34   :  { %v2068_v50 = vpop.permute.xlu1 %2067 }
 0xb35   :  { %5574 = vmatprep.subr.mxu1 %v2068_v50 }
 0xb36   :  { %v5887_v48 = vpop.eup %5886 }
 0xb37   :  { %v1692_v49 = vmul.f32 %v5887_v48, %v5883_v42 }
 0xb39   :  { %5556 = vmatmul.mubr.msk.f32.vlgmr.msra.gmra.mxu0 %vm271_vm2, %v1692_v49  ;;  %v1978_v49 = vsub.s32 3, %v6081_v25 }
 0xb3a   :  { %5564 = vmatpush3.msra.mxu0 %v6058_v13  ;;  %5571 = vmatprep.mubr.msk.f32.mxu0 %vm65_vm0, %v6019_v5 }
 0xb3b   :  { %5565 = vmatprep.subr.mxu0 %v6060_v14 }
 0xb3c   :  { %5566 = vmatpush3.msra.mxu0 %v6060_v14  ;;  %v43_v14 = vld [vmem:[%s6866_s5 + $0x70] sm:$0xff] }
 0xb3d   :  { %5567 = vmatprep.subr.mxu0 %v6066_v17 }
 0xb3e   :  { %5568 = vmatpush3.msra.mxu0 %v6066_v17  ;;  %v39_v17 = vld [vmem:[%s6866_s5 + $0x50] sm:$0xff] }
 0xb3f   :  { %5569 = vmatprep.subr.mxu0 %v6070_v20 }
 0xb40   :  { %5570 = vmatpush3.msra.mxu0 %v6070_v20  ;;  %v35_v20 = vld [vmem:[%s6866_s5 + $0x30] sm:$0xff] }
 0xb41   :  { %5572 = vmatmul.mubr.msk.f32.vlgmr.msra.gmra.mxu0 %vm65_vm0, %v6077_v23  ;;  %5585 = vmatprep.subr.mxu0 %v43_v14  ;;  %v31_v23 = vld [vmem:[%s6866_s5 + $0x10] sm:$0xff] }
 0xb42   :  { %5586 = vmatpush3.msra.mxu0 %v43_v14 }
 0xb43   :  { %5587 = vmatprep.subr.mxu0 %v39_v17 }
 0xb44   :  { %5588 = vmatpush3.msra.mxu0 %v39_v17 }
 0xb45   :  { %5589 = vmatprep.subr.mxu0 %v35_v20 }
 0xb46   :  { %5590 = vmatpush3.msra.mxu0 %v35_v20 }
 0xb47   :  { %5591 = vmatprep.subr.mxu0 %v31_v23 }
 0xb48   :  { %5592 = vmatpush3.msra.mxu0 %v31_v23 }
 0xb61   :  { %v1765_v2 = vpop.f32.mrf.mxu1 }
 0xb62   :  { %5560 = vmatprep.mubr.msk.f32.mxu1 %vm271_vm2, %v1765_v2 }
 0xb63   :  { %v5552_v13 = vpop.f32.mrf.mxu1 }
 0xbf9   :  { %v1841_v5 = vpop.f32.mrf.mxu0 }
 0xbfa   :  { %5561 = vmatmul.mubr.msk.f32.vlgmr.msra.gmra.mxu1 %vm271_vm2, %v1841_v5 }
 0xbfb   :  { %v5557_v33 = vpop.f32.mrf.mxu0  ;;  %5575 = vmatpush3.msra.mxu1 %v2068_v50 }
 0xcba   :  { %v5562_v53 = vpop.f32.mrf.mxu1 }
 0xcbb   :  { %v1930_v54 = vadd.f32 %v5562_v53, %v6256_v21  ;;  %v53_v53 = vld [vmem:[%s6872_s2] sm:$0xff] }
 0xcbc   :  { %v1920_v55 = vpop.f32.mrf.mxu1 }
 0xcbd   :  { %v1936_v39 = vadd.f32 %v1934_v52, %v1930_v54  ;;  %v1929_v45 = vadd.f32 %v1920_v55, %v6258_v24  ;;  %v54_v54 = vld [vmem:[%s6872_s2 + $0x8] sm:$0xff]  ;;  %v55_v55 = vld [vmem:[%s6872_s2 + $0x10] sm:$0xff] }
 0xcbf   :  { %v6304_v56 = vadd.f32 %v1936_v39, %v6046_v9  ;;  %v1935_v57 = vadd.f32 %v1934_v52, %v1929_v45  ;;  %v56_v39 = vld [vmem:[%s6872_s2 + $0x18] sm:$0xff]  ;;  %v5573_v45 = vpop.f32.mrf.mxu0 }
 0xcc1   :  { %v6307_v58 = vadd.f32 %v1935_v57, %v6014_v4  ;;  %v1942_v59 = vsel %vm65_vm0, %v6304_v56, 0.0  ;;  %v1949_v61 = vmul.f32 %v6304_v56, %v6304_v56 }
 0xcc2   :  { %1943 = vadd.xlane.f32.xlu1 %v1942_v59 }
 0xcc3   :  { %v1939_v60 = vsel %vm65_vm0, %v6307_v58, 0.0  ;;  %v1953_v62 = vsel %vm65_vm0, %v1949_v61, 0.0  ;;  %v1948_v9 = vmul.f32 %v6307_v58, %v6307_v58  ;;  %v2263_v61 = vsub.s32 5, %v6081_v25 }
 0xcc4   :  { %1940 = vadd.xlane.f32.xlu0 %v1939_v60 }
 0xcc5   :  { %v1950_v4 = vsel %vm65_vm0, %v1948_v9, 0.0  ;;  %v2384_v9 = vsub.s32 6, %v6081_v25 }
 0xcc8   :  { %1954 = vadd.xlane.f32.xlu0 %v1953_v62 }
 0xccc   :  { %1951 = vadd.xlane.f32.xlu0 %v1950_v4 }
 0xcd3   :  { %2063 = vrot.lane.b32.xlu1 %v6030_v6, %s5938_s10  ;;  %v49_v6 = vld [vmem:[%s6870_s1] sm:$0xff] }
 0xcd4   :  { %5593 = vmatprep.mubr.msk.f32.mxu0 %vm65_vm0, %v49_v6  ;;  %v2264_v6 = vrot.slane %v6087_v27, %v2263_v61 }
 0xcd7   :  { %2061 = vrot.lane.b32.xlu1 %v6051_v10, %s5938_s10  ;;  %v51_v10 = vld [vmem:[%s6870_s1 + $0x10] sm:$0xff] }
 0xcdb   :  { %2273 = vrot.lane.b32.xlu1 %v39_v17, %s5938_s10 }
 0xcdf   :  { %2392 = vrot.lane.b32.xlu1 %v43_v14, %s5934_s9 }
 0xce2   :  { %2065 = vrot.lane.b32.xlu0 %v6009_v3, %s5938_s10  ;;  %v50_v3 = vld [vmem:[%s6870_s1 + $0x8] sm:$0xff] }
 0xce3   :  { %2390 = vrot.lane.b32.xlu1 %v39_v17, %s5934_s9  ;;  %5594 = vmatmul.mubr.msk.f32.vlgmr.msra.gmra.mxu0 %vm65_vm0, %v50_v3 }
 0xce4   :  { %5596 = vmatprep.mubr.msk.f32.mxu0 %vm65_vm0, %v51_v10  ;;  %v2385_v10 = vrot.slane %v6087_v27, %v2384_v9 }
 0xce6   :  { %2275 = vrot.lane.b32.xlu0 %v43_v14, %s5938_s10 }
 0xce7   :  { %2386 = vrot.lane.b32.xlu1 %v31_v23, %s5934_s9  ;;  %5597 = vmatmul.mubr.msk.f32.gmra.mxu0 %vm65_vm0, %v52_v63  ;;  %v2162_v63 = vsub.s32 4, %v6081_v25 }
 0xce8   :  { %5621 = vmatprep.mubr.msk.f32.mxu0 %vm65_vm0, %v59_v0 }
 0xcea   :  { %2271 = vrot.lane.b32.xlu0 %v35_v20, %s5938_s10 }
 0xcee   :  { %2269 = vrot.lane.b32.xlu0 %v31_v23, %s5938_s10  ;;  %v60_v23 = vld [vmem:[%s6871_s4 + $0x8] sm:$0xff] }
 0xcf2   :  { %2388 = vrot.lane.b32.xlu0 %v35_v20, %s5934_s9  ;;  %v1979_v20 = vrot.slane %v46_v44, %v1978_v49 }
 0xd4b   :  { %v1944_v1 = vpop.xlane.xlu1 %1943 }
 0xd4c   :  { %v1947_v8 = vmul.f32 0.03125, %v1944_v1 }
 0xd4d   :  { %v1941_v7 = vpop.xlane.xlu0 %1940 }
 0xd4e   :  { %v1959_v15 = vmul.f32 %v1947_v8, %v1947_v8  ;;  %v1946_v19 = vmul.f32 0.03125, %v1941_v7  ;;  %v1963_v38 = vsub.f32 %v6304_v56, %v1947_v8  ;;  %v2052_v56 = vpop.f32.mrf.mxu0 }
 0xd4f   :  { %v2064_v11 = vpop.permute.xlu1 %2063 }
 0xd50   :  { %v1958_v31 = vmul.f32 %v1946_v19, %v1946_v19  ;;  %v1962_v2 = vsub.f32 %v6307_v58, %v1946_v19 }
 0xd51   :  { %v1955_v12 = vpop.xlane.xlu0 %1954 }
 0xd52   :  { %v1957_v21 = vmul.f32 0.03125, %v1955_v12  ;;  %v2163_v12 = vrot.slane %v6087_v27, %v2162_v63 }
 0xd53   :  { %v2062_v22 = vpop.permute.xlu1 %2061 }
 0xd54   :  { %v1961_v24 = vsub.f32 %v1957_v21, %v1959_v15 }
 0xd55   :  { %v1952_v30 = vpop.xlane.xlu0 %1951 }
 0xd56   :  { %v1965_v32 = vadd.f32 1e-05, %v1961_v24  ;;  %v1956_v34 = vmul.f32 0.03125, %v1952_v30 }
 0xd57   :  { %v2274_v37 = vpop.permute.xlu1 %2273 }
 0xd58   :  { %5888 = vrsqrt.f32 %v1965_v32  ;;  %v1960_v16 = vsub.f32 %v1956_v34, %v1958_v31 }
 0xd59   :  { %v2066_v35 = vpop.permute.xlu0 %2065 }
 0xd5a   :  { %v1964_v18 = vadd.f32 1e-05, %v1960_v16  ;;  %5576 = vmatprep.subr.mxu1 %v2066_v35  ;;  %v2157_v16 = vrot.slane %v6087_v27, %v1978_v49 }
 0xd5b   :  { %5577 = vmatpush3.msra.mxu1 %v2066_v35  ;;  %v2393_v36 = vpop.permute.xlu1 %2392 }
 0xd5c   :  { %5890 = vrsqrt.f32 %v1964_v18  ;;  %5578 = vmatprep.subr.mxu1 %v2064_v11  ;;  %5613 = vmatprep.subr.mxu0 %v2393_v36 }
 0xd5d   :  { %5579 = vmatpush3.msra.mxu1 %v2064_v11  ;;  %v2276_v40 = vpop.permute.xlu0 %2275  ;;  %5614 = vmatpush3.msra.mxu0 %v2393_v36 }
 0xd5e   :  { %5580 = vmatprep.subr.mxu1 %v2062_v22 }
 0xd5f   :  { %5581 = vmatpush3.msra.mxu1 %v2062_v22  ;;  %v2391_v42 = vpop.permute.xlu1 %2390 }
 0xd60   :  { %5599 = vmatprep.subr.mxu1 %v2276_v40  ;;  %5615 = vmatprep.subr.mxu0 %v2391_v42 }
 0xd61   :  { %v2272_v41 = vpop.permute.xlu0 %2271  ;;  %5616 = vmatpush3.msra.mxu0 %v2391_v42 }
 0xd63   :  { %v2387_v33 = vpop.permute.xlu1 %2386 }
 0xd65   :  { %v5889_v43 = vpop.eup %5888  ;;  %v2270_v46 = vpop.permute.xlu0 %2269 }
 0xd66   :  { %v1969_v48 = vmul.f32 %v5889_v43, %v1963_v38 }
 0xd68   :  { %v1975_v17 = vmul.f32 %v1973_v47, %v1969_v48 }
 0xd69   :  { %v5891_v13 = vpop.eup %5890  ;;  %v2389_v5 = vpop.permute.xlu0 %2388 }
 0xd6a   :  { %v1968_v14 = vmul.f32 %v5891_v13, %v1962_v2  ;;  %5617 = vmatprep.subr.mxu0 %v2389_v5  ;;  %v6370_v52 = vadd.f32 %v1979_v20, %v1975_v17 }
 0xd6b   :  { %5618 = vmatpush3.msra.mxu0 %v2389_v5 }
 0xd6c   :  { %v1974_v50 = vmul.f32 %v1973_v47, %v1968_v14  ;;  %5619 = vmatprep.subr.mxu0 %v2387_v33 }
 0xd6d   :  { %5620 = vmatpush3.msra.mxu0 %v2387_v33 }
 0xd6e   :  { %v6366_v51 = vadd.f32 %v1979_v20, %v1974_v50  ;;  %5622 = vmatmul.mubr.msk.f32.vlgmr.msra.gmra.mxu0 %vm65_vm0, %v60_v23  ;;  %5631 = vmatprep.subr.mxu0 %v5935_v28 }
 0xd6f   :  { %5635 = vmatprep.mubr.msk.f32.mxu0 %vm5936_vm1, %v5935_v28 }
 0xd70   :  { %5582 = vmatprep.mubr.msk.f32.mxu1 %vm65_vm0, %v6366_v51 }
 0xd71   :  { %5583 = vmatmul.mubr.msk.f32.vlgmr.msra.gmra.mxu1 %vm65_vm0, %v6370_v52 }
 0xd72   :  { %5600 = vmatpush3.msra.mxu1 %v2276_v40  ;;  %5607 = vmatprep.mubr.msk.f32.mxu1 %vm65_vm0, %v53_v53 }
 0xd73   :  { %5601 = vmatprep.subr.mxu1 %v2274_v37 }
 0xd74   :  { %5602 = vmatpush3.msra.mxu1 %v2274_v37 }
 0xd75   :  { %5603 = vmatprep.subr.mxu1 %v2272_v41 }
 0xd76   :  { %5604 = vmatpush3.msra.mxu1 %v2272_v41 }
 0xd77   :  { %5605 = vmatprep.subr.mxu1 %v2270_v46 }
 0xd78   :  { %5606 = vmatpush3.msra.mxu1 %v2270_v46 }
 0xd79   :  { %5608 = vmatmul.mubr.msk.f32.vlgmr.msra.gmra.mxu1 %vm65_vm0, %v54_v54  ;;  %5624 = vmatprep.subr.mxu1 %v5935_v28 }
 0xd7a   :  { %5610 = vmatprep.mubr.msk.f32.mxu1 %vm65_vm0, %v55_v55 }
 0xd7d   :  { %5611 = vmatmul.mubr.msk.f32.gmra.mxu1 %vm65_vm0, %v56_v39 }
 0xd7e   :  { %5628 = vmatprep.mubr.msk.f32.mxu1 %vm5936_vm1, %v5935_v28 }
 0xda3   :  { %v5595_v57 = vpop.f32.mrf.mxu0 }
 0xda4   :  { %v6420_v30 = vadd.f32 %v5595_v57, %v2163_v12 }
 0xda5   :  { %v2242_v58 = vpop.f32.mrf.mxu0 }
 0xda6   :  { %v6439_v35 = vadd.f32 %v2242_v58, %v2163_v12 }
 0xda7   :  { %v5598_v59 = vpop.f32.mrf.mxu0 }
 0xda8   :  { %v6441_v18 = vadd.f32 %v5598_v59, %v2163_v12 }
 0xda9   :  { %v2252_v60 = vpop.f32.mrf.mxu0 }
 0xdaa   :  { %v6463_v44 = vadd.f32 %v2252_v60, %v2163_v12 }
 0xe2e   :  { %v5623_v4 = vpop.f32.mrf.mxu0 }
 0xe2f   :  { %v2476_v32 = vadd.f32 %v5623_v4, %v2385_v10 }
 0xe30   :  { %v2470_v0 = vpop.f32.mrf.mxu0 }
 0xe31   :  { %v5584_v62 = vpop.f32.mrf.mxu1  ;;  %v2471_v11 = vadd.f32 %v2470_v0, %v2385_v10  ;;  %v6447_v42 = vmul.f32 0.25, %v2476_v32 }
 0xe32   :  { %v2151_v36 = vadd.f32 %v5584_v62, %v5573_v45 }
 0xe33   :  { %v2145_v3 = vpop.f32.mrf.mxu1  ;;  %v6418_v22 = vmul.f32 0.25, %v2471_v11 }
 0xe34   :  { %v2146_v31 = vadd.f32 %v2145_v3, %v2052_v56  ;;  %v2159_v43 = vadd.f32 %v2157_v16, %v2151_v36 }
 0xe36   :  { %v2158_v40 = vadd.f32 %v2157_v16, %v2146_v31  ;;  %v6485_v47 = vmul.f32 0.25, %v2159_v43 }
 0xe38   :  { %v6469_v38 = vmul.f32 0.25, %v2158_v40 }
 0xe39   :  { %v5609_v1 = vpop.f32.mrf.mxu1 }
 0xe3a   :  { %v6406_v7 = vadd.f32 %v5609_v1, %v2264_v6 }
 0xe3b   :  { %v2359_v8 = vpop.f32.mrf.mxu1 }
 0xe3c   :  { %5625 = vmatpush3.xpose.msk.msra.mxu1 %vm271_vm2, %v6406_v7  ;;  %v6414_v19 = vadd.f32 %v2359_v8, %v2264_v6  ;;  %v6432_v37 = vadd.f32 %v6406_v7, %v6420_v30 }
 0xe3d   :  { %v5612_v15 = vpop.f32.mrf.mxu1  ;;  %5626 = vmatprep.subr.mxu1 %v5935_v28 }
 0xe3e   :  { %v6416_v21 = vadd.f32 %v5612_v15, %v2264_v6  ;;  %v6453_v27 = vadd.f32 %v6414_v19, %v6439_v35 }
 0xe3f   :  { %v2369_v24 = vpop.f32.mrf.mxu1 }
 0xe40   :  { %5627 = vmatpush3.xpose.msk.msra.mxu1 %vm271_vm2, %v6414_v19  ;;  %5632 = vmatpush3.xpose.msk.msra.mxu0 %vm271_vm2, %v6416_v21  ;;  %v6428_v34 = vadd.f32 %v2369_v24, %v2264_v6  ;;  %v6457_v41 = vadd.f32 %v6416_v21, %v6441_v18 }
 0xe41   :  { %5633 = vmatprep.subr.mxu0 %v5935_v28  ;;  %5638 = vmatprep.subr.mxu1 %v5935_v28 }
 0xe42   :  { %v6476_v46 = vadd.f32 %v6428_v34, %v6463_v44 }
 0xe43   :  { %5629 = vmatmul.mubr.msk.f32.vlgmr.msra.gmra.mxu1 %vm271_vm2, %v6418_v22 }
 0xe44   :  { %5634 = vmatpush3.xpose.msk.msra.mxu0 %vm271_vm2, %v6428_v34  ;;  %5639 = vmatpush3.xpose.msk.msra.mxu1 %vm271_vm2, %v6432_v37 }
 0xe45   :  { %5640 = vmatprep.subr.mxu1 %v5935_v28  ;;  %5645 = vmatprep.subr.mxu0 %v5935_v28 }
 0xe46   :  { %5642 = vmatprep.mubr.msk.f32.mxu1 %vm5936_vm1, %v5935_v28 }
 0xe47   :  { %5636 = vmatmul.mubr.msk.f32.vlgmr.msra.gmra.mxu0 %vm271_vm2, %v6447_v42 }
 0xe48   :  { %5641 = vmatpush3.xpose.msk.msra.mxu1 %vm271_vm2, %v6453_v27  ;;  %5646 = vmatpush3.xpose.msk.msra.mxu0 %vm271_vm2, %v6457_v41 }
 0xe49   :  { %5647 = vmatprep.subr.mxu0 %v5935_v28  ;;  %5649 = vmatprep.mubr.msk.f32.mxu0 %vm5936_vm1, %v5935_v28 }
 0xe4a   :  { %5652 = vmatprep.subr.mxu1 %v5935_v28 }
 0xe4b   :  { %5643 = vmatmul.mubr.msk.f32.vlgmr.msra.gmra.mxu1 %vm271_vm2, %v6469_v38 }
 0xe4c   :  { %5648 = vmatpush3.xpose.msk.msra.mxu0 %vm271_vm2, %v6476_v46  ;;  %5656 = vmatprep.mubr.msk.f32.mxu1 %vm5936_vm1, %v5935_v28 }
 0xe4d   :  { %5666 = vmatprep.subr.mxu0 %v5935_v28 }
 0xe4f   :  { %5650 = vmatmul.mubr.msk.f32.vlgmr.msra.gmra.mxu0 %vm271_vm2, %v6485_v47 }
 0xe50   :  { %5670 = vmatprep.mubr.msk.f32.mxu0 %vm5936_vm1, %v5935_v28 }
 0xf03   :  { %v2558_v48 = vpop.f32.mrf.mxu1 }
 0xf05   :  { %v5630_v49 = vpop.f32.mrf.mxu1 }
 0xf07   :  { %v2637_v2 = vpop.f32.mrf.mxu0 }
 0xf09   :  { %v5637_v13 = vpop.f32.mrf.mxu0 }
 0xf0b   :  { %v2716_v5 = vpop.f32.mrf.mxu1 }
 0xf0c   :  { %v2717_v33 = vadd.f32 %v2716_v5, %v2558_v48 }
 0xf0d   :  { %v5644_v14 = vpop.f32.mrf.mxu1 }
 0xf0e   :  { %v2800_v17 = vsel %vm2799_vm3, %v2717_v33, -inf }
 0xf0f   :  { %v2795_v20 = vpop.f32.mrf.mxu0  ;;  %2801 = vmax.xlane.f32.xlu0 %v2800_v17 }
 0xf10   :  { %v2796_v23 = vadd.f32 %v2795_v20, %v2637_v2 }
 0xf11   :  { %v5651_v50 = vpop.f32.mrf.mxu0 }
 0xf12   :  { %v2803_v53 = vsel %vm2799_vm3, %v2796_v23, -inf }
 0xf13   :  { %2804 = vmax.xlane.f32.xlu1 %v2803_v53 }
 0xf24   :  { %2826 = vrot.lane.b32.xlu1 %v6420_v30, %s5937_s3 }
 0xf25   :  { %2824 = vrot.lane.b32.xlu0 %v6439_v35, %s5937_s3 }
 0xf28   :  { %2907 = vrot.lane.b32.xlu1 %v6441_v18, %s5937_s3 }
 0xf29   :  { %2988 = vrot.lane.b32.xlu0 %v6406_v7, %s5940_s12 }
 0xf2c   :  { %2905 = vrot.lane.b32.xlu1 %v6463_v44, %s5937_s3 }
 0xf2d   :  { %2986 = vrot.lane.b32.xlu0 %v6414_v19, %s5940_s12 }
 0xf30   :  { %3070 = vrot.lane.b32.xlu1 %v6416_v21, %s5940_s12 }
 0xf34   :  { %3068 = vrot.lane.b32.xlu1 %v6428_v34, %s5940_s12 }
 0xf38   :  { %3152 = vrot.lane.b32.xlu1 %v6432_v37, %s5940_s12 }
 0xf3c   :  { %3234 = vrot.lane.b32.xlu1 %v6457_v41, %s5940_s12 }
 0xf40   :  { %3232 = vrot.lane.b32.xlu1 %v6476_v46, %s5940_s12 }
 0xf44   :  { %3230 = vrot.lane.b32.xlu1 %v6485_v47, %s5940_s12 }
 0xf98   :  { %v2802_v54 = vpop.xlane.xlu0 %2801 }
 0xf99   :  { %v2806_v55 = vsub.f32 %v2717_v33, %v2802_v54 }
 0xf9b   :  { %v2808_v39 = vmul.f32 1.442695, %v2806_v55 }
 0xf9c   :  { %v2805_v45 = vpop.xlane.xlu1 %2804  ;;  %v2825_v56 = vpop.permute.xlu0 %2824 }
 0xf9d   :  { %5892 = vpow2.f32 %v2808_v39  ;;  %v2807_v57 = vsub.f32 %v2796_v23, %v2805_v45 }
 0xf9f   :  { %v2810_v58 = vmul.f32 1.442695, %v2807_v57 }
 0xfa0   :  { %v2827_v59 = vpop.permute.xlu1 %2826  ;;  %v2989_v60 = vpop.permute.xlu0 %2988 }
 0xfa1   :  { %5894 = vpow2.f32 %v2810_v58  ;;  %5653 = vmatpush3.msra.mxu1 %v2827_v59  ;;  %5667 = vmatpush3.xpose.msk.msra.mxu0 %vm271_vm2, %v2989_v60 }
 0xfa2   :  { %5654 = vmatprep.subr.mxu1 %v5935_v28  ;;  %5668 = vmatprep.subr.mxu0 %v5935_v28 }
 0xfa3   :  { %5655 = vmatpush3.msra.mxu1 %v2825_v56 }
 0xfa4   :  { %v2987_v62 = vpop.permute.xlu0 %2986  ;;  %5659 = vmatprep.subr.mxu1 %v5935_v28  ;;  %v2908_v0 = vpop.permute.xlu1 %2907 }
 0xfa5   :  { %5669 = vmatpush3.xpose.msk.msra.mxu0 %vm271_vm2, %v2987_v62 }
 0xfa6   :  { %5680 = vmatprep.subr.mxu0 %v5935_v28 }
 0xfa8   :  { %v2906_v1 = vpop.permute.xlu1 %2905 }
 0xfaa   :  { %v5893_v4 = vpop.eup %5892 }
 0xfab   :  { %v2812_v6 = vsel %vm2799_vm3, %v5893_v4, 0.0 }
 0xfac   :  { %2813 = vadd.xlane.f32.xlu0 %v2812_v6  ;;  %v3071_v8 = vpop.permute.xlu1 %3070 }
 0xfae   :  { %v5895_v3 = vpop.eup %5894 }
 0xfaf   :  { %v2815_v10 = vsel %vm2799_vm3, %v5895_v3, 0.0 }
 0xfb0   :  { %2816 = vadd.xlane.f32.xlu0 %v2815_v10  ;;  %v3069_v12 = vpop.permute.xlu1 %3068 }
 0xfb4   :  { %v3153_v31 = vpop.permute.xlu1 %3152 }
 0xfb8   :  { %v3235_v2 = vpop.permute.xlu1 %3234 }
 0xfbc   :  { %v3233_v13 = vpop.permute.xlu1 %3232 }
 0xfc0   :  { %v3231_v5 = vpop.permute.xlu1 %3230 }
 0xfc6   :  { %2984 = vrot.lane.b32.xlu0 %v6418_v22, %s5940_s12 }
 0xfca   :  { %3066 = vrot.lane.b32.xlu0 %v6447_v42, %s5940_s12 }
 0xfce   :  { %3150 = vrot.lane.b32.xlu0 %v6453_v27, %s5940_s12 }
 0xfd2   :  { %3148 = vrot.lane.b32.xlu0 %v6469_v38, %s5940_s12 }
0x1035   :  { %v2814_v11 = vpop.xlane.xlu0 %2813 }
0x1036   :  { %5896 = vrcp.f32 %v2814_v11 }
0x1039   :  { %v2817_v15 = vpop.xlane.xlu0 %2816 }
0x103a   :  { %5898 = vrcp.f32 %v2817_v15 }
0x103d   :  { %v2985_v24 = vpop.permute.xlu0 %2984 }
0x103e   :  { %5671 = vmatmul.mubr.msk.f32.vlgmr.msra.gmra.mxu0 %vm271_vm2, %v2985_v24 }
0x103f   :  { %5681 = vmatpush3.xpose.msk.msra.mxu0 %vm271_vm2, %v3153_v31  ;;  %5684 = vmatprep.mubr.msk.f32.mxu0 %vm5936_vm1, %v5935_v28 }
0x1040   :  { %5682 = vmatprep.subr.mxu0 %v5935_v28 }
0x1041   :  { %v3067_v32 = vpop.permute.xlu0 %3066 }
0x1043   :  { %v5897_v16 = vpop.eup %5896 }
0x1044   :  { %v2819_v36 = vmul.f32 %v5897_v16, %v5893_v4 }
0x1045   :  { %v3151_v40 = vpop.permute.xlu0 %3150 }
0x1046   :  { %5657 = vmatmul.mubr.msk.f32.vlgmr.msra.gmra.mxu1 %vm2799_vm3, %v2819_v36  ;;  %5683 = vmatpush3.xpose.msk.msra.mxu0 %vm271_vm2, %v3151_v40 }
0x1047   :  { %v5899_v43 = vpop.eup %5898  ;;  %5660 = vmatpush3.msra.mxu1 %v2908_v0  ;;  %5663 = vmatprep.mubr.msk.f32.mxu1 %vm5936_vm1, %v5935_v28 }
0x1048   :  { %5661 = vmatprep.subr.mxu1 %v5935_v28  ;;  %v2821_v48 = vmul.f32 %v5899_v43, %v5895_v3  ;;  %5694 = vmatprep.subr.mxu0 %v5935_v28 }
0x1049   :  { %5662 = vmatpush3.msra.mxu1 %v2906_v1  ;;  %v3149_v49 = vpop.permute.xlu0 %3148 }
0x104a   :  { %5673 = vmatprep.subr.mxu1 %v5935_v28  ;;  %5664 = vmatmul.mubr.msk.f32.vlgmr.msra.gmra.mxu1 %vm2799_vm3, %v2821_v48  ;;  %v6611_v48 = vld [vmem:[%s6866_s5 + $0x18] sm:$0xff] }
0x104b   :  { %5674 = vmatpush3.xpose.msk.msra.mxu1 %vm271_vm2, %v3071_v8  ;;  %5685 = vmatmul.mubr.msk.f32.vlgmr.msra.gmra.mxu0 %vm271_vm2, %v3149_v49 }
0x104c   :  { %5675 = vmatprep.subr.mxu1 %v5935_v28  ;;  %5677 = vmatprep.mubr.msk.f32.mxu1 %vm5936_vm1, %v5935_v28 }
0x104d   :  { %5698 = vmatprep.mubr.msk.f32.mxu0 %vm5936_vm1, %v5935_v28 }
0x104f   :  { %5676 = vmatpush3.xpose.msk.msra.mxu1 %vm271_vm2, %v3069_v12 }
0x1050   :  { %5687 = vmatprep.subr.mxu1 %v5935_v28 }
0x1052   :  { %5678 = vmatmul.mubr.msk.f32.vlgmr.msra.gmra.mxu1 %vm271_vm2, %v3067_v32 }
0x1053   :  { %5688 = vmatpush3.xpose.msk.msra.mxu1 %vm271_vm2, %v3235_v2  ;;  %5691 = vmatprep.mubr.msk.f32.mxu1 %vm5936_vm1, %v5935_v28 }
0x1054   :  { %5689 = vmatprep.subr.mxu1 %v5935_v28 }
0x1057   :  { %5690 = vmatpush3.xpose.msk.msra.mxu1 %vm271_vm2, %v3233_v13 }
0x1058   :  { %5701 = vmatprep.subr.mxu1 %v5935_v28 }
0x105a   :  { %5692 = vmatmul.mubr.msk.f32.vlgmr.msra.gmra.mxu1 %vm271_vm2, %v3231_v5 }
0x105b   :  { %5705 = vmatprep.mubr.msk.f32.mxu1 %vm5936_vm1, %v5935_v28 }
0x10fe   :  { %v3062_v33 = vpop.f32.mrf.mxu0 }
0x1100   :  { %v5672_v14 = vpop.f32.mrf.mxu0 }
0x1106   :  { %v6566_v17 = vpop.f32.mrf.mxu1 }
0x1108   :  { %v5658_v20 = vpop.f32.mrf.mxu1 }
0x110a   :  { %v6568_v23 = vpop.f32.mrf.mxu1 }
0x110b   :  { %v3226_v50 = vpop.f32.mrf.mxu0 }
0x110c   :  { %v3227_v53 = vadd.f32 %v3226_v50, %v3062_v33  ;;  %v5665_v54 = vpop.f32.mrf.mxu1 }
0x110d   :  { %v5686_v55 = vpop.f32.mrf.mxu0 }
0x110e   :  { %v3312_v39 = vsel %vm2799_vm3, %v3227_v53, -inf  ;;  %v6641_v55 = vld [vmem:[%s6866_s5 + $0x38] sm:$0xff] }
0x110f   :  { %3313 = vmax.xlane.f32.xlu0 %v3312_v39 }
0x1112   :  { %v3144_v45 = vpop.f32.mrf.mxu1 }
0x1114   :  { %v5679_v56 = vpop.f32.mrf.mxu1 }
0x111a   :  { %v3308_v57 = vpop.f32.mrf.mxu1 }
0x111b   :  { %v3309_v58 = vadd.f32 %v3308_v57, %v3144_v45 }
0x111c   :  { %v5693_v59 = vpop.f32.mrf.mxu1 }
0x111d   :  { %v3315_v60 = vsel %vm2799_vm3, %v3309_v58, -inf }
0x111e   :  { %3316 = vmax.xlane.f32.xlu1 %v3315_v60 }
0x112f   :  { %3336 = vrot.lane.b32.xlu1 %v6420_v30, %s5939_s11 }
0x1133   :  { %3334 = vrot.lane.b32.xlu1 %v6439_v35, %s5939_s11 }
0x1137   :  { %3413 = vrot.lane.b32.xlu1 %v6463_v44, %s5939_s11 }
0x113b   :  { %3740 = vrot.lane.b32.xlu1 %v6416_v21, %s5943_s15 }
0x113f   :  { %3738 = vrot.lane.b32.xlu1 %v6428_v34, %s5943_s15 }
0x1143   :  { %3822 = vrot.lane.b32.xlu1 %v6432_v37, %s5943_s15 }
0x1147   :  { %3904 = vrot.lane.b32.xlu1 %v6457_v41, %s5943_s15 }
0x114b   :  { %3902 = vrot.lane.b32.xlu1 %v6476_v46, %s5943_s15 }
0x114f   :  { %3900 = vrot.lane.b32.xlu1 %v6485_v47, %s5943_s15 }
0x1198   :  { %v3314_v62 = vpop.xlane.xlu0 %3313 }
0x1199   :  { %v3318_v4 = vsub.f32 %v3227_v53, %v3314_v62 }
0x119b   :  { %v3320_v6 = vmul.f32 1.442695, %v3318_v4 }
0x119d   :  { %5900 = vpow2.f32 %v3320_v6 }
0x11a7   :  { %v3317_v3 = vpop.xlane.xlu1 %3316 }
0x11a8   :  { %v3319_v10 = vsub.f32 %v3309_v58, %v3317_v3 }
0x11aa   :  { %v5901_v0 = vpop.eup %5900  ;;  %v3322_v1 = vmul.f32 1.442695, %v3319_v10 }
0x11ab   :  { %v3337_v8 = vpop.permute.xlu1 %3336  ;;  %v3324_v11 = vsel %vm2799_vm3, %v5901_v0, 0.0 }
0x11ac   :  { %5902 = vpow2.f32 %v3322_v1  ;;  %3325 = vadd.xlane.f32.xlu0 %v3324_v11  ;;  %5695 = vmatpush3.msra.mxu0 %v3337_v8 }
0x11ad   :  { %5696 = vmatprep.subr.mxu0 %v5935_v28 }
0x11af   :  { %v3335_v12 = vpop.permute.xlu1 %3334 }
0x11b0   :  { %5697 = vmatpush3.msra.mxu0 %v3335_v12 }
0x11b1   :  { %5708 = vmatprep.subr.mxu0 %v6641_v55 }
0x11b3   :  { %v3414_v16 = vpop.permute.xlu1 %3413 }
0x11b7   :  { %v3741_v49 = vpop.permute.xlu1 %3740 }
0x11b9   :  { %v5903_v15 = vpop.eup %5902 }
0x11ba   :  { %v3327_v24 = vsel %vm2799_vm3, %v5903_v15, 0.0 }
0x11bb   :  { %3328 = vadd.xlane.f32.xlu0 %v3327_v24  ;;  %v3739_v13 = vpop.permute.xlu1 %3738 }
0x11bf   :  { %v3823_v20 = vpop.permute.xlu1 %3822 }
0x11c3   :  { %v3905_v53 = vpop.permute.xlu1 %3904 }
0x11c7   :  { %v3903_v54 = vpop.permute.xlu1 %3902 }
0x11d1   :  { %3415 = vrot.lane.b32.xlu0 %v6441_v18, %s5939_s11 }
0x11d5   :  { %3658 = vrot.lane.b32.xlu0 %v6406_v7, %s5943_s15 }
0x11d9   :  { %3656 = vrot.lane.b32.xlu0 %v6414_v19, %s5943_s15 }
0x11dd   :  { %3654 = vrot.lane.b32.xlu0 %v6418_v22, %s5943_s15 }
0x11e1   :  { %3736 = vrot.lane.b32.xlu0 %v6447_v42, %s5943_s15 }
0x11e5   :  { %3820 = vrot.lane.b32.xlu0 %v6453_v27, %s5943_s15 }
0x11e9   :  { %3818 = vrot.lane.b32.xlu0 %v6469_v38, %s5943_s15 }
0x1235   :  { %v3326_v31 = vpop.xlane.xlu0 %3325 }
0x1236   :  { %5904 = vrcp.f32 %v3326_v31 }
0x1243   :  { %v5905_v32 = vpop.eup %5904 }
0x1244   :  { %v3329_v36 = vpop.xlane.xlu0 %3328  ;;  %v3331_v40 = vmul.f32 %v5905_v32, %v5901_v0 }
0x1245   :  { %5906 = vrcp.f32 %v3329_v36 }
0x1246   :  { %5699 = vmatmul.mubr.msk.f32.vlgmr.msra.gmra.mxu0 %vm2799_vm3, %v3331_v40 }
0x1247   :  { %5709 = vmatpush3.msra.mxu0 %v6641_v55 }
0x1248   :  { %v3416_v43 = vpop.permute.xlu0 %3415  ;;  %5718 = vmatprep.subr.mxu0 %v5935_v28 }
0x1249   :  { %5702 = vmatpush3.msra.mxu1 %v3416_v43 }
0x124a   :  { %5703 = vmatprep.subr.mxu1 %v5935_v28 }
0x124b   :  { %5704 = vmatpush3.msra.mxu1 %v3414_v16 }
0x124c   :  { %5713 = vmatprep.subr.mxu1 %v6611_v48  ;;  %v3659_v2 = vpop.permute.xlu0 %3658 }
0x1250   :  { %v3657_v14 = vpop.permute.xlu0 %3656 }
0x1252   :  { %v5907_v5 = vpop.eup %5906 }
0x1253   :  { %v3333_v33 = vmul.f32 %v5907_v5, %v5903_v15 }
0x1254   :  { %v3655_v50 = vpop.permute.xlu0 %3654 }
0x1255   :  { %5706 = vmatmul.mubr.msk.f32.vlgmr.msra.gmra.mxu1 %vm2799_vm3, %v3333_v33 }
0x1256   :  { %5715 = vmatprep.mubr.msk.f32.mxu1 %vm271_vm2, %v6566_v17  ;;  %5714 = vmatpush3.msra.mxu1 %v6611_v48 }
0x1257   :  { %5725 = vmatprep.subr.mxu1 %v5935_v28 }
0x1258   :  { %v3737_v17 = vpop.permute.xlu0 %3736 }
0x1259   :  { %5716 = vmatmul.mubr.msk.f32.vlgmr.msra.gmra.mxu1 %vm271_vm2, %v6568_v23  ;;  %v3901_v23 = vpop.permute.xlu1 %3900 }
0x125a   :  { %5726 = vmatpush3.xpose.msk.msra.mxu1 %vm271_vm2, %v3741_v49  ;;  %5729 = vmatprep.mubr.msk.f32.mxu1 %vm5936_vm1, %v5935_v28 }
0x125b   :  { %5727 = vmatprep.subr.mxu1 %v5935_v28 }
0x125c   :  { %v3821_v59 = vpop.permute.xlu0 %3820 }
0x125e   :  { %5728 = vmatpush3.xpose.msk.msra.mxu1 %vm271_vm2, %v3739_v13 }
0x125f   :  { %5739 = vmatprep.subr.mxu1 %v5935_v28 }
0x1260   :  { %v3819_v6 = vpop.permute.xlu0 %3818 }
0x1261   :  { %5730 = vmatmul.mubr.msk.f32.vlgmr.msra.gmra.mxu1 %vm271_vm2, %v3737_v17 }
0x1262   :  { %5740 = vmatpush3.xpose.msk.msra.mxu1 %vm271_vm2, %v3905_v53  ;;  %5743 = vmatprep.mubr.msk.f32.mxu1 %vm5936_vm1, %v5935_v28 }
0x1263   :  { %5741 = vmatprep.subr.mxu1 %v5935_v28 }
0x1266   :  { %5742 = vmatpush3.xpose.msk.msra.mxu1 %vm271_vm2, %v3903_v54 }
0x1267   :  { %5753 = vmatprep.subr.mxu1 %v5935_v28 }
0x1269   :  { %5744 = vmatmul.mubr.msk.f32.vlgmr.msra.gmra.mxu1 %vm271_vm2, %v3901_v23 }
0x126a   :  { %5757 = vmatprep.mubr.msk.f32.mxu1 %vm5936_vm1, %v5935_v28 }
0x1306   :  { %v3409_v39 = vpop.f32.mrf.mxu0 }
0x1307   :  { %5710 = vmatprep.mubr.msk.f32.mxu0 %vm271_vm2, %v3409_v39 }
0x1308   :  { %v5700_v45 = vpop.f32.mrf.mxu0 }
0x1315   :  { %v3488_v56 = vpop.f32.mrf.mxu1 }
0x1316   :  { %5711 = vmatmul.mubr.msk.f32.vlgmr.msra.gmra.mxu0 %vm271_vm2, %v3488_v56  ;;  %v6732_v56 = vld [vmem:[%s6866_s5 + $0x58] sm:$0xff] }
0x1317   :  { %5719 = vmatpush3.xpose.msk.msra.mxu0 %vm271_vm2, %v3659_v2  ;;  %v5707_v57 = vpop.f32.mrf.mxu1  ;;  %5722 = vmatprep.mubr.msk.f32.mxu0 %vm5936_vm1, %v5935_v28 }
0x1318   :  { %5720 = vmatprep.subr.mxu0 %v5935_v28 }
0x1319   :  { %v6652_v58 = vpop.f32.mrf.mxu1 }
0x131b   :  { %5721 = vmatpush3.xpose.msk.msra.mxu0 %vm271_vm2, %v3657_v14  ;;  %v6657_v60 = vpop.f32.mrf.mxu1 }
0x131c   :  { %5732 = vmatprep.subr.mxu0 %v5935_v28 }
0x131e   :  { %5723 = vmatmul.mubr.msk.f32.vlgmr.msra.gmra.mxu0 %vm271_vm2, %v3655_v50 }
0x131f   :  { %5733 = vmatpush3.xpose.msk.msra.mxu0 %vm271_vm2, %v3823_v20  ;;  %5736 = vmatprep.mubr.msk.f32.mxu0 %vm5936_vm1, %v5935_v28 }
0x1320   :  { %5734 = vmatprep.subr.mxu0 %v5935_v28 }
0x1321   :  { %v3814_v62 = vpop.f32.mrf.mxu1 }
0x1323   :  { %v5731_v4 = vpop.f32.mrf.mxu1  ;;  %5735 = vmatpush3.xpose.msk.msra.mxu0 %vm271_vm2, %v3821_v59 }
0x1324   :  { %5746 = vmatprep.subr.mxu0 %v5935_v28 }
0x1326   :  { %5737 = vmatmul.mubr.msk.f32.vlgmr.msra.gmra.mxu0 %vm271_vm2, %v3819_v6 }
0x1327   :  { %5750 = vmatprep.mubr.msk.f32.mxu0 %vm5936_vm1, %v5935_v28 }
0x1329   :  { %v3978_v3 = vpop.f32.mrf.mxu1 }
0x132a   :  { %v3979_v10 = vadd.f32 %v3978_v3, %v3814_v62 }
0x132b   :  { %v5745_v0 = vpop.f32.mrf.mxu1 }
0x132c   :  { %v3985_v1 = vsel %vm2799_vm3, %v3979_v10, -inf }
0x132d   :  { %3986 = vmax.xlane.f32.xlu1 %v3985_v1 }
0x133e   :  { %4006 = vrot.lane.b32.xlu1 %v6420_v30, %s5942_s14 }
0x1342   :  { %4004 = vrot.lane.b32.xlu1 %v6439_v35, %s5942_s14 }
0x1346   :  { %4083 = vrot.lane.b32.xlu1 %v6463_v44, %s5942_s14 }
0x134a   :  { %4331 = vrot.lane.b32.xlu1 %v6416_v21, %s5946_s18 }
0x134e   :  { %4329 = vrot.lane.b32.xlu1 %v6428_v34, %s5946_s18 }
0x1352   :  { %4413 = vrot.lane.b32.xlu1 %v6432_v37, %s5946_s18 }
0x1356   :  { %4495 = vrot.lane.b32.xlu1 %v6457_v41, %s5946_s18 }
0x135a   :  { %4493 = vrot.lane.b32.xlu1 %v6476_v46, %s5946_s18 }
0x135e   :  { %4491 = vrot.lane.b32.xlu1 %v6485_v47, %s5946_s18 }
0x13b6   :  { %v3987_v8 = vpop.xlane.xlu1 %3986 }
0x13b7   :  { %v3989_v34 = vsub.f32 %v3979_v10, %v3987_v8 }
0x13b9   :  { %v3992_v37 = vmul.f32 1.442695, %v3989_v34 }
0x13ba   :  { %v4007_v11 = vpop.permute.xlu1 %4006 }
0x13bb   :  { %5747 = vmatpush3.msra.mxu0 %v4007_v11  ;;  %5908 = vpow2.f32 %v3992_v37 }
0x13bc   :  { %5748 = vmatprep.subr.mxu0 %v5935_v28 }
0x13be   :  { %v4005_v21 = vpop.permute.xlu1 %4004 }
0x13bf   :  { %5749 = vmatpush3.msra.mxu0 %v4005_v21 }
0x13c0   :  { %5760 = vmatprep.subr.mxu0 %v6732_v56 }
0x13c2   :  { %v4084_v33 = vpop.permute.xlu1 %4083 }
0x13c8   :  { %v5909_v16 = vpop.eup %5908 }
0x13c9   :  { %v3997_v36 = vsel %vm2799_vm3, %v5909_v16, 0.0 }
0x13d6   :  { %v6688_v12 = vpop.f32.mrf.mxu0 }
0x13d8   :  { %v6690_v15 = vpop.f32.mrf.mxu0 }
0x13de   :  { %v3732_v41 = vpop.f32.mrf.mxu0 }
0x13e0   :  { %v5724_v24 = vpop.f32.mrf.mxu0 }
0x13e6   :  { %v3896_v46 = vpop.f32.mrf.mxu0 }
0x13e7   :  { %v3897_v31 = vadd.f32 %v3896_v46, %v3732_v41 }
0x13e8   :  { %v5738_v32 = vpop.f32.mrf.mxu0 }
0x13e9   :  { %v3982_v47 = vsel %vm2799_vm3, %v3897_v31, -inf  ;;  %v3651_v32 = vadd.f32 %v6652_v58, %v6688_v12 }
0x13ea   :  { %3983 = vmax.xlane.f32.xlu0 %v3982_v47 }
0x13ee   :  { %3998 = vadd.xlane.f32.xlu0 %v3997_v36 }
0x1473   :  { %v3984_v40 = vpop.xlane.xlu0 %3983 }
0x1474   :  { %v3988_v43 = vsub.f32 %v3897_v31, %v3984_v40 }
0x1476   :  { %v3990_v49 = vmul.f32 1.442695, %v3988_v43 }
0x1477   :  { %v3999_v5 = vpop.xlane.xlu0 %3998 }
0x1478   :  { %5910 = vpow2.f32 %v3990_v49 }
0x1479   :  { %5912 = vrcp.f32 %v3999_v5 }
0x1485   :  { %v5911_v2 = vpop.eup %5910 }
0x1486   :  { %v3994_v13 = vsel %vm2799_vm3, %v5911_v2, 0.0 }
0x1487   :  { %3995 = vadd.xlane.f32.xlu0 %v3994_v13 }
0x149d   :  { %4085 = vrot.lane.b32.xlu0 %v6441_v18, %s5942_s14 }
0x14a1   :  { %4249 = vrot.lane.b32.xlu0 %v6406_v7, %s5946_s18  ;;  %v5913_v7 = vpop.eup %5912 }
0x14a5   :  { %4247 = vrot.lane.b32.xlu0 %v6414_v19, %s5946_s18  ;;  %v4332_v19 = vpop.permute.xlu1 %4331 }
0x14a9   :  { %4245 = vrot.lane.b32.xlu0 %v6418_v22, %s5946_s18  ;;  %v4003_v22 = vmul.f32 %v5913_v7, %v5909_v16  ;;  %v3646_v16 = vadd.f32 %v6657_v60, %v6690_v15 }
0x14ad   :  { %4327 = vrot.lane.b32.xlu0 %v6447_v42, %s5946_s18 }
0x14b1   :  { %4411 = vrot.lane.b32.xlu0 %v6453_v27, %s5946_s18  ;;  %v4330_v27 = vpop.permute.xlu1 %4329 }
0x14b5   :  { %4409 = vrot.lane.b32.xlu0 %v6469_v38, %s5946_s18  ;;  %v4414_v54 = vpop.permute.xlu1 %4413 }
0x14b9   :  { %v4496_v10 = vpop.permute.xlu1 %4495 }
0x14bd   :  { %v4494_v0 = vpop.permute.xlu1 %4493 }
0x14c1   :  { %v4492_v34 = vpop.permute.xlu1 %4491 }
0x1510   :  { %v3996_v14 = vpop.xlane.xlu0 %3995 }
0x1511   :  { %5914 = vrcp.f32 %v3996_v14 }
0x1514   :  { %v4086_v20 = vpop.permute.xlu0 %4085 }
0x1515   :  { %5754 = vmatpush3.msra.mxu1 %v4086_v20 }
0x1516   :  { %5755 = vmatprep.subr.mxu1 %v5935_v28 }
0x1517   :  { %5756 = vmatpush3.msra.mxu1 %v4084_v33 }
0x1518   :  { %v4250_v42 = vpop.permute.xlu0 %4249  ;;  %5758 = vmatmul.mubr.msk.f32.vlgmr.msra.gmra.mxu1 %vm2799_vm3, %v4003_v22  ;;  %5765 = vmatprep.subr.mxu1 %v5935_v28 }
0x1519   :  { %5766 = vmatpush3.xpose.msk.msra.mxu1 %vm271_vm2, %v4250_v42  ;;  %5769 = vmatprep.mubr.msk.f32.mxu1 %vm5936_vm1, %v5935_v28 }
0x151a   :  { %5767 = vmatprep.subr.mxu1 %v5935_v28 }
0x151c   :  { %v4248_v38 = vpop.permute.xlu0 %4247 }
0x151d   :  { %5768 = vmatpush3.xpose.msk.msra.mxu1 %vm271_vm2, %v4248_v38 }
0x151e   :  { %v5915_v50 = vpop.eup %5914  ;;  %5779 = vmatprep.subr.mxu1 %v5935_v28 }
0x151f   :  { %v4001_v53 = vmul.f32 %v5915_v50, %v5911_v2 }
0x1520   :  { %v4246_v17 = vpop.permute.xlu0 %4245 }
0x1521   :  { %5751 = vmatmul.mubr.msk.f32.vlgmr.msra.gmra.mxu0 %vm2799_vm3, %v4001_v53  ;;  %5770 = vmatmul.mubr.msk.f32.vlgmr.msra.gmra.mxu1 %vm271_vm2, %v4246_v17 }
0x1522   :  { %5780 = vmatpush3.xpose.msk.msra.mxu1 %vm271_vm2, %v4414_v54  ;;  %5783 = vmatprep.mubr.msk.f32.mxu1 %vm5936_vm1, %v5935_v28 }
0x1523   :  { %5781 = vmatprep.subr.mxu1 %v5935_v28  ;;  %5761 = vmatpush3.msra.mxu0 %v6732_v56 }
0x1524   :  { %v4328_v23 = vpop.permute.xlu0 %4327  ;;  %5772 = vmatprep.subr.mxu0 %v5935_v28 }
0x1528   :  { %v4412_v39 = vpop.permute.xlu0 %4411 }
0x1529   :  { %5782 = vmatpush3.xpose.msk.msra.mxu1 %vm271_vm2, %v4412_v39  ;;  %v4838_v39 = vsub.s32 7, %v6081_v25 }
0x152a   :  { %5793 = vmatprep.subr.mxu1 %v5935_v28 }
0x152c   :  { %v4410_v45 = vpop.permute.xlu0 %4409 }
0x152d   :  { %5784 = vmatmul.mubr.msk.f32.vlgmr.msra.gmra.mxu1 %vm271_vm2, %v4410_v45  ;;  %v5932_v45 = vld [vmem:[%s6869_s7] sm:$0xff] }
0x152e   :  { %5797 = vmatprep.mubr.msk.f32.mxu1 %vm5936_vm1, %v5935_v28 }
0x15d8   :  { %v4158_v57 = vpop.f32.mrf.mxu1 }
0x15da   :  { %v5759_v59 = vpop.f32.mrf.mxu1 }
0x15e1   :  { %v4079_v62 = vpop.f32.mrf.mxu0  ;;  %v4323_v4 = vpop.f32.mrf.mxu1 }
0x15e2   :  { %5762 = vmatprep.mubr.msk.f32.mxu0 %vm271_vm2, %v4079_v62 }
0x15e3   :  { %v5752_v6 = vpop.f32.mrf.mxu0  ;;  %5763 = vmatmul.mubr.msk.f32.vlgmr.msra.gmra.mxu0 %vm271_vm2, %v4158_v57  ;;  %v5771_v3 = vpop.f32.mrf.mxu1 }
0x15e4   :  { %5773 = vmatpush3.xpose.msk.msra.mxu0 %vm271_vm2, %v4332_v19  ;;  %5776 = vmatprep.mubr.msk.f32.mxu0 %vm5936_vm1, %v5935_v28 }
0x15e5   :  { %5774 = vmatprep.subr.mxu0 %v5935_v28 }
0x15e8   :  { %5775 = vmatpush3.xpose.msk.msra.mxu0 %vm271_vm2, %v4330_v27 }
0x15e9   :  { %5786 = vmatprep.subr.mxu0 %v5935_v28 }
0x15eb   :  { %5777 = vmatmul.mubr.msk.f32.vlgmr.msra.gmra.mxu0 %vm271_vm2, %v4328_v23 }
0x15ec   :  { %5787 = vmatpush3.xpose.msk.msra.mxu0 %vm271_vm2, %v4496_v10  ;;  %5790 = vmatprep.mubr.msk.f32.mxu0 %vm5936_vm1, %v5935_v28 }
0x15ed   :  { %v4487_v1 = vpop.f32.mrf.mxu1  ;;  %5788 = vmatprep.subr.mxu0 %v5935_v28 }
0x15ee   :  { %v4488_v8 = vadd.f32 %v4487_v1, %v4323_v4 }
0x15ef   :  { %v5785_v11 = vpop.f32.mrf.mxu1 }
0x15f0   :  { %5789 = vmatpush3.xpose.msk.msra.mxu0 %vm271_vm2, %v4494_v0  ;;  %v4573_v21 = vsel %vm2799_vm3, %v4488_v8, -inf }
0x15f1   :  { %4574 = vmax.xlane.f32.xlu0 %v4573_v21  ;;  %5800 = vmatprep.subr.mxu0 %v5935_v28 }
0x15f3   :  { %5791 = vmatmul.mubr.msk.f32.vlgmr.msra.gmra.mxu0 %vm271_vm2, %v4492_v34 }
0x15f4   :  { %5804 = vmatprep.mubr.msk.f32.mxu0 %vm5936_vm1, %v5935_v28 }
0x167a   :  { %v4575_v37 = vpop.xlane.xlu0 %4574 }
0x167b   :  { %v4579_v41 = vsub.f32 %v4488_v8, %v4575_v37  ;;  %v4995_v37 = vld [vmem:[%s6873_s6 + $0x30] sm:$0xff] }
0x167d   :  { %v4581_v24 = vmul.f32 1.442695, %v4579_v41 }
0x167f   :  { %5916 = vpow2.f32 %v4581_v24 }
0x168c   :  { %v5917_v46 = vpop.eup %5916 }
0x168d   :  { %v4585_v31 = vsel %vm2799_vm3, %v5917_v46, 0.0 }
0x168e   :  { %4586 = vadd.xlane.f32.xlu0 %v4585_v31 }
0x16a3   :  { %v5764_v47 = vpop.f32.mrf.mxu0 }
0x16a4   :  { %v4244_v36 = vadd.f32 %v5764_v47, %v3651_v32 }
0x16a5   :  { %v4234_v40 = vpop.f32.mrf.mxu0 }
0x16a6   :  { %v4243_v43 = vadd.f32 %v4234_v40, %v3646_v16 }
0x16ab   :  { %v4405_v49 = vpop.f32.mrf.mxu0 }
0x16ad   :  { %v5778_v2 = vpop.f32.mrf.mxu0 }
0x16b3   :  { %v4569_v13 = vpop.f32.mrf.mxu0 }
0x16b4   :  { %v4570_v5 = vadd.f32 %v4569_v13, %v4405_v49 }
0x16b5   :  { %v5792_v33 = vpop.f32.mrf.mxu0 }
0x16b6   :  { %v4576_v14 = vsel %vm2799_vm3, %v4570_v5, -inf }
0x16b7   :  { %4577 = vmax.xlane.f32.xlu1 %v4576_v14 }
0x16c8   :  { %4597 = vrot.lane.b32.xlu1 %v6420_v30, %s5945_s17 }
0x16cc   :  { %4595 = vrot.lane.b32.xlu1 %v6439_v35, %s5945_s17 }
0x16d0   :  { %4674 = vrot.lane.b32.xlu1 %v6463_v44, %s5945_s17  ;;  %v44_v44 = vld [vmem:[%s6866_s5 + $0x78] sm:$0xff] }
0x1717   :  { %v4587_v58 = vpop.xlane.xlu0 %4586 }
0x1718   :  { %5918 = vrcp.f32 %v4587_v58 }
0x1725   :  { %v5919_v20 = vpop.eup %5918 }
0x1726   :  { %v4592_v22 = vmul.f32 %v5919_v20, %v5917_v46 }
0x1740   :  { %v4578_v60 = vpop.xlane.xlu1 %4577 }
0x1741   :  { %v4580_v12 = vsub.f32 %v4570_v5, %v4578_v60 }
0x1743   :  { %v4583_v15 = vmul.f32 1.442695, %v4580_v12  ;;  %v6819_v12 = vld [vmem:[%s6869_s7 + $0x8] sm:$0xff] }
0x1744   :  { %v4598_v7 = vpop.permute.xlu1 %4597 }
0x1745   :  { %5920 = vpow2.f32 %v4583_v15  ;;  %5794 = vmatpush3.msra.mxu1 %v4598_v7  ;;  %v4877_v15 = vrot.slane %v6819_v12, %v2162_v63  ;;  %v4992_v63 = vld [vmem:[%s6873_s6 + $0x18] sm:$0xff] }
0x1746   :  { %5795 = vmatprep.subr.mxu1 %v5935_v28 }
0x1748   :  { %v4596_v19 = vpop.permute.xlu1 %4595 }
0x1749   :  { %5796 = vmatpush3.msra.mxu1 %v4596_v19  ;;  %v4883_v19 = vrot.slane %v6819_v12, %v2263_v61  ;;  %v4991_v61 = vld [vmem:[%s6873_s6 + $0x10] sm:$0xff] }
0x174a   :  { %5798 = vmatmul.mubr.msk.f32.vlgmr.msra.gmra.mxu1 %vm2799_vm3, %v4592_v22  ;;  %5807 = vmatprep.subr.mxu1 %v44_v44 }
0x174b   :  { %5808 = vmatpush3.msra.mxu1 %v44_v44 }
0x174c   :  { %v4675_v38 = vpop.permute.xlu1 %4674 }
0x1752   :  { %v5921_v30 = vpop.eup %5920 }
0x1753   :  { %v4588_v35 = vsel %vm2799_vm3, %v5921_v30, 0.0 }
0x1754   :  { %4589 = vadd.xlane.f32.xlu0 %v4588_v35 }
0x176a   :  { %4676 = vrot.lane.b32.xlu0 %v6441_v18, %s5945_s17 }
0x17dd   :  { %v4590_v42 = vpop.xlane.xlu0 %4589 }
0x17de   :  { %5922 = vrcp.f32 %v4590_v42 }
0x17e1   :  { %v4677_v27 = vpop.permute.xlu0 %4676 }
0x17e2   :  { %5801 = vmatpush3.msra.mxu0 %v4677_v27 }
0x17e3   :  { %5802 = vmatprep.subr.mxu0 %v5935_v28  ;;  %v4839_v28 = vrot.slane %v5932_v45, %v4838_v39 }
0x17e4   :  { %5803 = vmatpush3.msra.mxu0 %v4675_v38 }
0x17eb   :  { %v5923_v50 = vpop.eup %5922 }
0x17ec   :  { %v4594_v53 = vmul.f32 %v5923_v50, %v5921_v30  ;;  %v4990_v50 = vld [vmem:[%s6873_s6 + $0x8] sm:$0xff] }
0x17ee   :  { %5805 = vmatmul.mubr.msk.f32.vlgmr.msra.gmra.mxu0 %vm2799_vm3, %v4594_v53  ;;  %v4989_v53 = vld [vmem:[%s6873_s6] sm:$0xff] }
0x180a   :  { %v4670_v17 = vpop.f32.mrf.mxu1 }
0x180b   :  { %5809 = vmatprep.mubr.msk.f32.mxu1 %vm271_vm2, %v4670_v17  ;;  %v4889_v17 = vrot.slane %v6819_v12, %v63_v26 }
0x180c   :  { %v5799_v18 = vpop.f32.mrf.mxu1 }
0x18ae   :  { %v4749_v54 = vpop.f32.mrf.mxu0 }
0x18af   :  { %5810 = vmatmul.mubr.msk.f32.vlgmr.msra.gmra.mxu1 %vm271_vm2, %v4749_v54 }
0x18b0   :  { %v5806_v23 = vpop.f32.mrf.mxu0 }
0x196f   :  { %v5811_v57 = vpop.f32.mrf.mxu1 }
0x1970   :  { %v4835_v59 = vadd.f32 %v5811_v57, %v4244_v36 }
0x1971   :  { %v4825_v62 = vpop.f32.mrf.mxu1 }
0x1972   :  { %v4841_v4 = vadd.f32 %v4839_v28, %v4835_v59  ;;  %v4834_v6 = vadd.f32 %v4825_v62, %v4243_v43  ;;  %v5000_v59 = vrot.slane %v6819_v12, %v149_v29 }
0x1974   :  { %v6787_v3 = vadd.f32 %v4841_v4, %v6370_v52  ;;  %v4840_v10 = vadd.f32 %v4839_v28, %v4834_v6 }
0x1976   :  { %v4842_v0 = vadd.f32 %v4840_v10, %v6366_v51  ;;  %v4847_v1 = vsel %vm65_vm0, %v6787_v3, 0.0  ;;  %v4853_v34 = vmul.f32 %v6787_v3, %v6787_v3  ;;  %v4996_v51 = vld [vmem:[%s6873_s6 + $0x38] sm:$0xff] }
0x1977   :  { %4848 = vadd.xlane.f32.xlu1 %v4847_v1  ;;  %5823 = vmatprep.subr.mxu1 %v4996_v51 }
0x1978   :  { %v4844_v8 = vsel %vm65_vm0, %v4842_v0, 0.0  ;;  %v4852_v11 = vmul.f32 %v4842_v0, %v4842_v0  ;;  %v4857_v52 = vsel %vm65_vm0, %v4853_v34, 0.0  ;;  %5824 = vmatpush3.msra.mxu1 %v4996_v51 }
0x1979   :  { %4845 = vadd.xlane.f32.xlu0 %v4844_v8  ;;  %5825 = vmatprep.subr.mxu1 %v4995_v37 }
0x197a   :  { %v4854_v21 = vsel %vm65_vm0, %v4852_v11, 0.0  ;;  %5826 = vmatpush3.msra.mxu1 %v4995_v37 }
0x197d   :  { %4855 = vadd.xlane.f32.xlu0 %v4854_v21 }
0x1981   :  { %4858 = vadd.xlane.f32.xlu0 %v4857_v52 }
0x1988   :  { %4900 = vrot.lane.b32.xlu1 %v44_v44, %s5937_s3 }
0x198c   :  { %4896 = vrot.lane.b32.xlu1 %v6641_v55, %s5937_s3  ;;  %v4994_v55 = vld [vmem:[%s6873_s6 + $0x28] sm:$0xff] }
0x198d   :  { %5827 = vmatprep.subr.mxu1 %v4994_v55 }
0x198e   :  { %5828 = vmatpush3.msra.mxu1 %v4994_v55 }
0x1990   :  { %4894 = vrot.lane.b32.xlu1 %v6611_v48, %s5937_s3  ;;  %v4993_v48 = vld [vmem:[%s6873_s6 + $0x20] sm:$0xff] }
0x1991   :  { %5829 = vmatprep.subr.mxu1 %v4993_v48 }
0x1992   :  { %5830 = vmatpush3.msra.mxu1 %v4993_v48 }
0x1993   :  { %5831 = vmatprep.subr.mxu1 %v4992_v63 }
0x1994   :  { %5832 = vmatpush3.msra.mxu1 %v4992_v63 }
0x1995   :  { %5833 = vmatprep.subr.mxu1 %v4991_v61 }
0x1996   :  { %5834 = vmatpush3.msra.mxu1 %v4991_v61 }
0x1997   :  { %4898 = vrot.lane.b32.xlu0 %v6732_v56, %s5937_s3  ;;  %5835 = vmatprep.subr.mxu1 %v4990_v50 }
0x1998   :  { %5836 = vmatpush3.msra.mxu1 %v4990_v50 }
0x1999   :  { %5837 = vmatprep.subr.mxu1 %v4989_v53 }
0x199a   :  { %5838 = vmatpush3.msra.mxu1 %v4989_v53 }
0x1a00   :  { %v4849_v56 = vpop.xlane.xlu1 %4848 }
0x1a01   :  { %v4851_v32 = vmul.f32 0.03125, %v4849_v56 }
0x1a02   :  { %v4846_v41 = vpop.xlane.xlu0 %4845 }
0x1a03   :  { %v4850_v24 = vmul.f32 0.03125, %v4846_v41  ;;  %v4863_v49 = vmul.f32 %v4851_v32, %v4851_v32  ;;  %v4867_v22 = vsub.f32 %v6787_v3, %v4851_v32 }
0x1a04   :  { %v4901_v46 = vpop.permute.xlu1 %4900 }
0x1a05   :  { %5812 = vmatprep.subr.mxu0 %v4901_v46  ;;  %v4862_v47 = vmul.f32 %v4850_v24, %v4850_v24  ;;  %v4866_v60 = vsub.f32 %v4842_v0, %v4850_v24 }
0x1a06   :  { %v4856_v31 = vpop.xlane.xlu0 %4855  ;;  %5813 = vmatpush3.msra.mxu0 %v4901_v46 }
0x1a07   :  { %v4860_v16 = vmul.f32 0.03125, %v4856_v31 }
0x1a08   :  { %v4897_v43 = vpop.permute.xlu1 %4896 }
0x1a09   :  { %v4864_v36 = vsub.f32 %v4860_v16, %v4862_v47 }
0x1a0a   :  { %v4859_v40 = vpop.xlane.xlu0 %4858 }
0x1a0b   :  { %v4868_v2 = vadd.f32 1e-05, %v4864_v36  ;;  %v4861_v13 = vmul.f32 0.03125, %v4859_v40  ;;  %v5118_v36 = vrot.slane %v6819_v12, %v2384_v9 }
0x1a0c   :  { %v4895_v58 = vpop.permute.xlu1 %4894 }
0x1a0d   :  { %5924 = vrsqrt.f32 %v4868_v2  ;;  %v4865_v5 = vsub.f32 %v4861_v13, %v4863_v49  ;;  %v5124_v49 = vrot.slane %v6819_v12, %v4838_v39 }
0x1a0e   :  { %v4899_v33 = vpop.permute.xlu0 %4898 }
0x1a0f   :  { %v4869_v14 = vadd.f32 1e-05, %v4865_v5  ;;  %5814 = vmatprep.subr.mxu0 %v4899_v33 }
0x1a10   :  { %5815 = vmatpush3.msra.mxu0 %v4899_v33 }
0x1a11   :  { %5926 = vrsqrt.f32 %v4869_v14  ;;  %5816 = vmatprep.subr.mxu0 %v4897_v43 }
0x1a12   :  { %5817 = vmatpush3.msra.mxu0 %v4897_v43 }
0x1a13   :  { %5818 = vmatprep.subr.mxu0 %v4895_v58 }
0x1a14   :  { %5819 = vmatpush3.msra.mxu0 %v4895_v58 }
0x1a1a   :  { %v5925_v7 = vpop.eup %5924 }
0x1a1b   :  { %v4872_v20 = vmul.f32 %v5925_v7, %v4866_v60 }
0x1a1d   :  { %v4878_v30 = vmul.f32 %v4877_v15, %v4872_v20 }
0x1a1e   :  { %v5927_v35 = vpop.eup %5926 }
0x1a1f   :  { %v4873_v44 = vmul.f32 %v5927_v35, %v4867_v22  ;;  %v4884_v42 = vadd.f32 %v4883_v19, %v4878_v30 }
0x1a21   :  { %v4879_v27 = vmul.f32 %v4877_v15, %v4873_v44  ;;  %5820 = vmatprep.mubr.msk.f32.mxu0 %vm65_vm0, %v4884_v42 }
0x1a23   :  { %v4885_v38 = vadd.f32 %v4883_v19, %v4879_v27 }
0x1a25   :  { %5821 = vmatmul.mubr.msk.f32.vlgmr.msra.gmra.mxu0 %vm65_vm0, %v4885_v38 }
0x1ae5   :  { %v5822_v18 = vpop.f32.mrf.mxu0 }
0x1ae6   :  { %v4984_v54 = vadd.f32 %v5822_v18, %v4889_v17 }
0x1ae7   :  { %v4978_v23 = vpop.f32.mrf.mxu0 }
0x1ae8   :  { %v4979_v45 = vadd.f32 %v4978_v23, %v4889_v17  ;;  %v4988_v57 = vmax.f32 %v4984_v54, 0.0 }
0x1aea   :  { %v4987_v28 = vmax.f32 %v4979_v45, 0.0 }
0x1aec   :  { %5839 = vmatprep.mubr.msk.f32.mxu1 %vm5001_vm4, %v4987_v28 }
0x1aed   :  { %5840 = vmatmul.mubr.msk.f32.vlgmr.msra.gmra.mxu1 %vm5001_vm4, %v4988_v57 }
0x1bad   :  { %v5841_v62 = vpop.f32.mrf.mxu1 }
0x1bae   :  { %v5080_v4 = vadd.f32 %v5841_v62, %v5000_v59 }
0x1baf   :  { %v5074_v6 = vpop.f32.mrf.mxu1 }
0x1bb0   :  { %v5084_v3 = vadd.f32 %v5080_v4, %v4885_v38  ;;  %v5075_v10 = vadd.f32 %v5074_v6, %v5000_v59 }
0x1bb2   :  { %v5083_v0 = vadd.f32 %v5075_v10, %v4884_v42  ;;  %v5088_v26 = vsel %vm65_vm0, %v5084_v3, 0.0  ;;  %v5094_v21 = vmul.f32 %v5084_v3, %v5084_v3 }
0x1bb3   :  { %5089 = vadd.xlane.f32.xlu1 %v5088_v26 }
0x1bb4   :  { %v5085_v1 = vsel %vm65_vm0, %v5083_v0, 0.0  ;;  %v5093_v8 = vmul.f32 %v5083_v0, %v5083_v0  ;;  %v5098_v34 = vsel %vm65_vm0, %v5094_v21, 0.0 }
0x1bb5   :  { %5086 = vadd.xlane.f32.xlu0 %v5085_v1 }
0x1bb6   :  { %v5095_v11 = vsel %vm65_vm0, %v5093_v8, 0.0 }
0x1bb9   :  { %5096 = vadd.xlane.f32.xlu0 %v5095_v11 }
0x1bbd   :  { %5099 = vadd.xlane.f32.xlu0 %v5098_v34 }
0x1c3c   :  { %v5090_v51 = vpop.xlane.xlu1 %5089 }
0x1c3d   :  { %v5092_v55 = vmul.f32 0.03125, %v5090_v51 }
0x1c3e   :  { %v5087_v29 = vpop.xlane.xlu0 %5086 }
0x1c3f   :  { %v5091_v52 = vmul.f32 0.03125, %v5087_v29  ;;  %v5104_v46 = vmul.f32 %v5092_v55, %v5092_v55  ;;  %v5108_v13 = vsub.f32 %v5084_v3, %v5092_v55 }
0x1c41   :  { %v5103_v48 = vmul.f32 %v5091_v52, %v5091_v52  ;;  %v5107_v40 = vsub.f32 %v5083_v0, %v5091_v52 }
0x1c42   :  { %v5097_v37 = vpop.xlane.xlu0 %5096 }
0x1c43   :  { %v5101_v56 = vmul.f32 0.03125, %v5097_v37 }
0x1c45   :  { %v5105_v41 = vsub.f32 %v5101_v56, %v5103_v48 }
0x1c46   :  { %v5100_v24 = vpop.xlane.xlu0 %5099 }
0x1c47   :  { %v5109_v31 = vadd.f32 1e-05, %v5105_v41  ;;  %v5102_v32 = vmul.f32 0.03125, %v5100_v24 }
0x1c49   :  { %5928 = vrsqrt.f32 %v5109_v31  ;;  %v5106_v47 = vsub.f32 %v5102_v32, %v5104_v46 }
0x1c4b   :  { %v5110_v16 = vadd.f32 1e-05, %v5106_v47 }
0x1c4d   :  { %5930 = vrsqrt.f32 %v5110_v16 }
0x1c56   :  { %v5929_v43 = vpop.eup %5928 }
0x1c57   :  { %v5113_v2 = vmul.f32 %v5929_v43, %v5107_v40 }
0x1c59   :  { %v5119_v5 = vmul.f32 %v5118_v36, %v5113_v2 }
0x1c5a   :  { %v5931_v33 = vpop.eup %5930 }
0x1c5b   :  { %v5125_v14 = vadd.f32 %v5124_v49, %v5119_v5  ;;  %v5114_v58 = vmul.f32 %v5931_v33, %v5108_v13 }
0x1c5d   :  { %5127 = vst.msk [vmem:[%s6874_s8] sm:$0xff] %vm65_vm0, %v5125_v14  ;;  %v5120_v60 = vmul.f32 %v5118_v36, %v5114_v58 }
0x1c5f   :  { %v5126_v15 = vadd.f32 %v5124_v49, %v5120_v60 }
0x1c61   :  { %5128 = vst.msk [vmem:[%s6874_s8 + $0x8] sm:$0xff] %vm65_vm0, %v5126_v15 }

</bundles_post_ra>
